<compile_context>
chip_gen: v7x
topology: tpu7x:2x2x1
jax: 0.10.0
libtpu: 0.0.40
codegen_flags: <defaults>
</compile_context>

<pallas_src>
import jax
import jax.numpy as jnp
from jax import lax
from jax.experimental import pallas as pl
from jax.experimental.pallas import tpu as pltpu

EPS = 1e-5
LANE = 128
VMEM_LIMIT = 48 * 1024 * 1024  # explicit scoped-VMEM budget (safe on v5e/v6e/v7x)


def _round_up(x, m):
    return (x + m - 1) // m * m


def _pick_tk(kp):
    for t in (512, 384, 256, 128):
        if kp % t == 0:
            return t
    return 128


# ----------------------------- Pallas kernels ------------------------------

def _conv_stats_kernel(p_ref, w_ref, z_ref, s1_ref, s2_ref, acc_ref):
    """One (TM, TN) tile of z = patches @ W, K-tiled into an f32 accumulator.

    On the last K step: write z and the per-channel partial BN statistics
    (sum and sum-of-squares over this M tile, broadcast over 8 sublanes)."""
    k = pl.program_id(1)

    @pl.when(k == 0)
    def _():
        acc_ref[...] = jnp.zeros_like(acc_ref)

    acc_ref[...] += jnp.dot(p_ref[...], w_ref[...],
                            preferred_element_type=jnp.float32)

    @pl.when(k == pl.num_programs(1) - 1)
    def _():
        acc = acc_ref[...]
        z_ref[...] = acc
        s1 = jnp.sum(acc, axis=0, keepdims=True)
        s2 = jnp.sum(acc * acc, axis=0, keepdims=True)
        s1_ref[...] = jnp.broadcast_to(s1, s1_ref.shape)
        s2_ref[...] = jnp.broadcast_to(s2, s2_ref.shape)


def _bn_relu_kernel(z_ref, a_ref, b_ref, o_ref):
    # out = relu(z * scale + shift)     (BN folded into per-channel affine)
    o_ref[...] = jnp.maximum(z_ref[...] * a_ref[...] + b_ref[...], 0.0)


def _bn_add_bn_relu_kernel(z_ref, a2_ref, b2_ref, s_ref, as_ref, bs_ref, o_ref):
    # out = relu(bn2(z) + bn_s(shortcut))  ; identity shortcut uses scale=1, shift=0
    main = z_ref[...] * a2_ref[...] + b2_ref[...]
    short = s_ref[...] * as_ref[...] + bs_ref[...]
    o_ref[...] = jnp.maximum(main + short, 0.0)


# ------------------------------ pallas_call glue ----------------------------

def _conv_matmul_stats(patches, wmat, tm):
    """Tiled z = patches @ wmat (bf16 in, f32 acc) + per-tile BN partial stats."""
    m, kdim = patches.shape
    cout = wmat.shape[1]
    tn = _round_up(cout, LANE)
    kp = _round_up(kdim, LANE)
    tk = _pick_tk(kp)
    mp = _round_up(m, tm)
    m_tiles, k_tiles = mp // tm, kp // tk

    p = jnp.pad(patches, ((0, mp - m), (0, kp - kdim))).astype(jnp.bfloat16)
    w = jnp.pad(wmat, ((0, kp - kdim), (0, tn - cout))).astype(jnp.bfloat16)

    z, s1, s2 = pl.pallas_call(
        _conv_stats_kernel,
        out_shape=(jax.ShapeDtypeStruct((mp, tn), jnp.float32),
                   jax.ShapeDtypeStruct((m_tiles * 8, tn), jnp.float32),
                   jax.ShapeDtypeStruct((m_tiles * 8, tn), jnp.float32)),
        grid=(m_tiles, k_tiles),
        in_specs=[pl.BlockSpec((tm, tk), lambda i, k: (i, k)),
                  pl.BlockSpec((tk, tn), lambda i, k: (k, 0))],
        out_specs=[pl.BlockSpec((tm, tn), lambda i, k: (i, 0)),
                   pl.BlockSpec((8, tn), lambda i, k: (i, 0)),
                   pl.BlockSpec((8, tn), lambda i, k: (i, 0))],
        scratch_shapes=[pltpu.VMEM((tm, tn), jnp.float32)],
        compiler_params=pltpu.CompilerParams(
            dimension_semantics=("parallel", "arbitrary"),
            vmem_limit_bytes=VMEM_LIMIT),
    )(p, w)
    return z, (s1, s2), mp, tn


def _bn_affine(stats, m_true, gamma, beta, tn):
    """Finalize BN batch stats (tiny, done in plain JAX) -> per-channel scale/shift."""
    s1, s2 = stats
    c = s1.shape[-1]
    s1 = jnp.sum(s1.reshape(-1, 8, c)[:, 0, :], axis=0)
    s2 = jnp.sum(s2.reshape(-1, 8, c)[:, 0, :], axis=0)
    mu = s1 / m_true
    var = jnp.maximum(s2 / m_true - mu * mu, 0.0)     # biased var, f32, clamped
    rsig = lax.rsqrt(var + EPS)
    g = jnp.pad(gamma.reshape(-1), (0, tn - gamma.size))
    b = jnp.pad(beta.reshape(-1), (0, tn - beta.size))
    scale = g * rsig
    shift = b - mu * scale
    return scale.reshape(1, tn), shift.reshape(1, tn)


def _apply_bn_relu(z, scale, shift, tm):
    mp, tn = z.shape
    m_tiles = mp // tm
    return pl.pallas_call(
        _bn_relu_kernel,
        out_shape=jax.ShapeDtypeStruct((mp, tn), jnp.float32),
        grid=(m_tiles,),
        in_specs=[pl.BlockSpec((tm, tn), lambda i: (i, 0)),
                  pl.BlockSpec((1, tn), lambda i: (0, 0)),
                  pl.BlockSpec((1, tn), lambda i: (0, 0))],
        out_specs=pl.BlockSpec((tm, tn), lambda i: (i, 0)),
        compiler_params=pltpu.CompilerParams(
            dimension_semantics=("parallel",),
            vmem_limit_bytes=VMEM_LIMIT),
    )(z, scale, shift)


def _apply_bn_add_bn_relu(z, a2, b2, sc, a_s, b_s, tm):
    mp, tn = z.shape
    m_tiles = mp // tm
    return pl.pallas_call(
        _bn_add_bn_relu_kernel,
        out_shape=jax.ShapeDtypeStruct((mp, tn), jnp.float32),
        grid=(m_tiles,),
        in_specs=[pl.BlockSpec((tm, tn), lambda i: (i, 0)),
                  pl.BlockSpec((1, tn), lambda i: (0, 0)),
                  pl.BlockSpec((1, tn), lambda i: (0, 0)),
                  pl.BlockSpec((tm, tn), lambda i: (i, 0)),
                  pl.BlockSpec((1, tn), lambda i: (0, 0)),
                  pl.BlockSpec((1, tn), lambda i: (0, 0))],
        out_specs=pl.BlockSpec((tm, tn), lambda i: (i, 0)),
        compiler_params=pltpu.CompilerParams(
            dimension_semantics=("parallel",),
            vmem_limit_bytes=VMEM_LIMIT),
    )(z, a2, b2, sc, a_s, b_s)


def _im2col(x_nhwc, ksize, stride, pad):
    """JAX glue: extract (M, k*k*C) patch matrix for a kxk conv (rows = n,i,j)."""
    N, H, W, C = x_nhwc.shape
    xp = jnp.pad(x_nhwc, ((0, 0), (pad, pad), (pad, pad), (0, 0)))
    Ho = (H + 2 * pad - ksize) // stride + 1
    Wo = (W + 2 * pad - ksize) // stride + 1
    cols = []
    for kh in range(ksize):
        for kw in range(ksize):
            cols.append(xp[:, kh:kh + stride * Ho:stride,
                           kw:kw + stride * Wo:stride, :])
    patches = jnp.concatenate(cols, axis=-1).reshape(N * Ho * Wo, ksize * ksize * C)
    return patches, (Ho, Wo)


def basic_block_forward(x_nchw, params, stride=1, tm=256):
    """BasicBlock.forward. x_nchw: (N, Cin, H, W) -> (N, planes, Ho, Wo)."""
    x = jnp.transpose(x_nchw, (0, 2, 3, 1)).astype(jnp.float32)  # NHWC
    N, H, W, Cin = x.shape
    planes = params["w1"].shape[-1]
    has_proj = (stride != 1) or (Cin != planes)

    # ---- conv1 + bn1 + relu --------------------------------------------
    p1, (Ho, Wo) = _im2col(x, 3, stride, 1)
    M = N * Ho * Wo
    w1m = params["w1"].reshape(9 * Cin, planes)          # rows ordered (kh,kw,cin)
    z1, st1, mp, tn = _conv_matmul_stats(p1, w1m, tm)
    a1, b1 = _bn_affine(st1, M, params["g1"], params["b1"], tn)
    y1p = _apply_bn_relu(z1, a1, b1, tm)                 # (Mp, TN)
    y1 = y1p[:M, :planes].reshape(N, Ho, Wo, planes)

    # ---- conv2 + bn2 ----------------------------------------------------
    p2, _ = _im2col(y1, 3, 1, 1)
    w2m = params["w2"].reshape(9 * planes, planes)
    z2, st2, _, _ = _conv_matmul_stats(p2, w2m, tm)
    a2, b2 = _bn_affine(st2, M, params["g2"], params["b2"], tn)

    # ---- shortcut -------------------------------------------------------
    if has_proj:
        xs = x[:, ::stride, ::stride, :].reshape(M, Cin)      # 1x1-conv input
        wsm = params["ws"].reshape(Cin, planes)
        zs, sts, _, _ = _conv_matmul_stats(xs, wsm, tm)
        a_s, b_s = _bn_affine(sts, M, params["gs"], params["bs"], tn)
        sc = zs
    else:
        sc = jnp.pad(x.reshape(M, Cin), ((0, mp - M), (0, tn - Cin)))
        a_s = jnp.ones((1, tn), jnp.float32)
        b_s = jnp.zeros((1, tn), jnp.float32)

    # ---- fused bn2 + shortcut add + relu --------------------------------
    out = _apply_bn_add_bn_relu(z2, a2, b2, sc, a_s, b_s, tm)
    out = out[:M, :planes].reshape(N, Ho, Wo, planes)
    return jnp.transpose(out, (0, 3, 1, 2))  # back to NCHW


# ------------------------------ reference (plain JAX) -----------------------

def _ref_forward(x_nchw, params, stride=1):
    x = jnp.transpose(x_nchw, (0, 2, 3, 1)).astype(jnp.float32)
    planes = params["w1"].shape[-1]
    has_proj = (stride != 1) or (x.shape[-1] != planes)

    def conv(x, w, s, pad):
        return lax.conv_general_dilated(
            x, w, (s, s), [(pad, pad), (pad, pad)],
            dimension_numbers=("NHWC", "HWIO", "NHWC"))

    def bn(z, g, b):
        mu = jnp.mean(z, axis=(0, 1, 2), keepdims=True)
        var = jnp.mean((z - mu) ** 2, axis=(0, 1, 2), keepdims=True)
        return (z - mu) * lax.rsqrt(var + EPS) * g.reshape(1, 1, 1, -1) + b.reshape(1, 1, 1, -1)

    out = jax.nn.relu(bn(conv(x, params["w1"], stride, 1), params["g1"], params["b1"]))
    out = bn(conv(out, params["w2"], 1, 1), params["g2"], params["b2"])
    if has_proj:
        sc = bn(conv(x, params["ws"], stride, 0), params["gs"], params["bs"])
    else:
        sc = x
    out = jax.nn.relu(out + sc)
    return jnp.transpose(out, (0, 3, 1, 2))


# ------------------------------ parameter init ------------------------------

def init_params(key, in_planes, planes, stride=1):
    ks = jax.random.split(key, 9)
    p = {
        "w1": 0.1 * jax.random.normal(ks[0], (3, 3, in_planes, planes), jnp.float32),
        "w2": 0.1 * jax.random.normal(ks[1], (3, 3, planes, planes), jnp.float32),
        "g1": 1.0 + 0.1 * jax.random.normal(ks[2], (1, planes), jnp.float32),
        "b1": 0.1 * jax.random.normal(ks[3], (1, planes), jnp.float32),
        "g2": 1.0 + 0.1 * jax.random.normal(ks[4], (1, planes), jnp.float32),
        "b2": 0.1 * jax.random.normal(ks[5], (1, planes), jnp.float32),
    }
    if stride != 1 or in_planes != planes:
        p["ws"] = 0.1 * jax.random.normal(ks[6], (1, 1, in_planes, planes), jnp.float32)
        p["gs"] = 1.0 + 0.1 * jax.random.normal(ks[7], (1, planes), jnp.float32)
        p["bs"] = 0.1 * jax.random.normal(ks[8], (1, planes), jnp.float32)
    return p


# ----------------------------------- main -----------------------------------

if __name__ == "__main__":
    key = jax.random.PRNGKey(0)
    kx, kp, kx2, kp2 = jax.random.split(key, 4)

    fwd = jax.jit(basic_block_forward, static_argnames=("stride", "tm"))

    # Case 1: projection shortcut (in_planes != planes).
    N, in_planes, planes, H, W, stride = 2, 4, 8, 16, 16, 1
    x = jax.random.normal(kx, (N, in_planes, H, W), jnp.float32)
    params = init_params(kp, in_planes, planes, stride)
    out = jax.block_until_ready(fwd(x, params, stride=stride))
    ref = jax.block_until_ready(_ref_forward(x, params, stride=stride))
    assert out.shape == (N, planes, H, W)
    assert jnp.allclose(out, ref, rtol=5e-2, atol=5e-2), "proj-shortcut mismatch"

    # Case 2: identity shortcut (in_planes == planes, stride 1).
    x2 = jax.random.normal(kx2, (N, planes, H, W), jnp.float32)
    params2 = init_params(kp2, planes, planes, 1)
    out2 = jax.block_until_ready(fwd(x2, params2, stride=1))
    ref2 = jax.block_until_ready(_ref_forward(x2, params2, stride=1))
    assert out2.shape == (N, planes, H, W)
    assert jnp.allclose(out2, ref2, rtol=5e-2, atol=5e-2), "identity-shortcut mismatch"

    print("KERNEL_OK")
</pallas_src>

<mosaic_0001>
module attributes {stable_mosaic.version = 11 : i64} {
  func.func @_conv_stats_kernel(%arg0: i32, %arg1: i32, %arg2: memref<256x128xbf16, #tpu.memory_space<vmem>>, %arg3: memref<128x128xbf16, #tpu.memory_space<vmem>>, %arg4: memref<256x128xf32, #tpu.memory_space<vmem>>, %arg5: memref<8x128xf32, #tpu.memory_space<vmem>>, %arg6: memref<8x128xf32, #tpu.memory_space<vmem>>, %arg7: memref<256x128xf32, #tpu.memory_space<vmem>>) attributes {dimension_semantics = [#tpu.dimension_semantics<parallel>, #tpu.dimension_semantics<arbitrary>], iteration_bounds = array<i64: 2, 1>, scalar_prefetch = 0 : i64, scratch_operands = 1 : i64, tpu.core_type = #tpu.core_type<tc>, window_params = [{transform_indices = @transform_0, window_bounds = array<i64: 256, 128>}, {transform_indices = @transform_1, window_bounds = array<i64: 128, 128>}, {transform_indices = @transform_2, window_bounds = array<i64: 256, 128>}, {transform_indices = @transform_3, window_bounds = array<i64: 8, 128>}, {transform_indices = @transform_4, window_bounds = array<i64: 8, 128>}]} {
    %c0_i32 = arith.constant 0 : i32
    %0 = arith.cmpi eq, %arg1, %c0_i32 : i32
    %1 = arith.extui %0 : i1 to i32
    %c0_i32_0 = arith.constant 0 : i32
    %2 = arith.cmpi ne, %1, %c0_i32_0 : i32
    scf.if %2 {
      %cst_10 = arith.constant 0.000000e+00 : f32
      %12 = vector.broadcast %cst_10 : f32 to vector<256x128xf32>
      %c0_11 = arith.constant 0 : index
      %c0_12 = arith.constant 0 : index
      %13 = vector.load %arg7[%c0_11, %c0_12] : memref<256x128xf32, #tpu.memory_space<vmem>>, vector<256x128xf32>
      tpu.vector_store %arg7[%c0_11, %c0_12], %12 {strides = array<i32>} : memref<256x128xf32, #tpu.memory_space<vmem>>, vector<256x128xf32>,
    } else {
    }
    %c0 = arith.constant 0 : index
    %c0_1 = arith.constant 0 : index
    %3 = vector.load %arg7[%c0, %c0_1] : memref<256x128xf32, #tpu.memory_space<vmem>>, vector<256x128xf32>
    %c0_2 = arith.constant 0 : index
    %c0_3 = arith.constant 0 : index
    %4 = vector.load %arg2[%c0_2, %c0_3] : memref<256x128xbf16, #tpu.memory_space<vmem>>, vector<256x128xbf16>
    %c0_4 = arith.constant 0 : index
    %c0_5 = arith.constant 0 : index
    %5 = vector.load %arg3[%c0_4, %c0_5] : memref<128x128xbf16, #tpu.memory_space<vmem>>, vector<128x128xbf16>
    %cst = arith.constant dense<0.000000e+00> : vector<256x128xf32>
    %6 = tpu.matmul %4, %5, %cst {dimension_numbers = #tpu.dot_dimension_numbers<[1], [0], [0], [1], [0, 0, 1, 1], [], []>} : vector<256x128xbf16>, vector<128x128xbf16>, vector<256x128xf32> -> vector<256x128xf32>
    %7 = arith.addf %3, %6 : vector<256x128xf32>
    %c0_6 = arith.constant 0 : index
    %c0_7 = arith.constant 0 : index
    %8 = vector.load %arg7[%c0_6, %c0_7] : memref<256x128xf32, #tpu.memory_space<vmem>>, vector<256x128xf32>
    tpu.vector_store %arg7[%c0_6, %c0_7], %7 {strides = array<i32>} : memref<256x128xf32, #tpu.memory_space<vmem>>, vector<256x128xf32>,
    %c0_i32_8 = arith.constant 0 : i32
    %9 = arith.cmpi eq, %arg1, %c0_i32_8 : i32
    %10 = arith.extui %9 : i1 to i32
    %c0_i32_9 = arith.constant 0 : i32
    %11 = arith.cmpi ne, %10, %c0_i32_9 : i32
    scf.if %11 {
      %c0_10 = arith.constant 0 : index
      %c0_11 = arith.constant 0 : index
      %12 = vector.load %arg7[%c0_10, %c0_11] : memref<256x128xf32, #tpu.memory_space<vmem>>, vector<256x128xf32>
      %c0_12 = arith.constant 0 : index
      %c0_13 = arith.constant 0 : index
      %13 = vector.load %arg4[%c0_12, %c0_13] : memref<256x128xf32, #tpu.memory_space<vmem>>, vector<256x128xf32>
      tpu.vector_store %arg4[%c0_12, %c0_13], %12 {strides = array<i32>} : memref<256x128xf32, #tpu.memory_space<vmem>>, vector<256x128xf32>,
      %cst_14 = arith.constant dense<0.000000e+00> : vector<128xf32>
      %14 = vector.multi_reduction <add>, %12, %cst_14 [0] : vector<256x128xf32> to vector<128xf32>
      %15 = vector.shape_cast %14 : vector<128xf32> to vector<1x128xf32>
      %16 = arith.mulf %12, %12 : vector<256x128xf32>
      %cst_15 = arith.constant dense<0.000000e+00> : vector<128xf32>
      %17 = vector.multi_reduction <add>, %16, %cst_15 [0] : vector<256x128xf32> to vector<128xf32>
      %18 = vector.shape_cast %17 : vector<128xf32> to vector<1x128xf32>
      %19 = vector.shape_cast %15 : vector<1x128xf32> to vector<1x128xf32>
      %20 = vector.broadcast %19 : vector<1x128xf32> to vector<8x128xf32>
      %c0_16 = arith.constant 0 : index
      %c0_17 = arith.constant 0 : index
      %21 = vector.load %arg5[%c0_16, %c0_17] : memref<8x128xf32, #tpu.memory_space<vmem>>, vector<8x128xf32>
      tpu.vector_store %arg5[%c0_16, %c0_17], %20 {strides = array<i32>} : memref<8x128xf32, #tpu.memory_space<vmem>>, vector<8x128xf32>,
      %22 = vector.shape_cast %18 : vector<1x128xf32> to vector<1x128xf32>
      %23 = vector.broadcast %22 : vector<1x128xf32> to vector<8x128xf32>
      %c0_18 = arith.constant 0 : index
      %c0_19 = arith.constant 0 : index
      %24 = vector.load %arg6[%c0_18, %c0_19] : memref<8x128xf32, #tpu.memory_space<vmem>>, vector<8x128xf32>
      tpu.vector_store %arg6[%c0_18, %c0_19], %23 {strides = array<i32>} : memref<8x128xf32, #tpu.memory_space<vmem>>, vector<8x128xf32>,
    } else {
    }
    return
  }
  func.func @transform_0(%arg0: i32, %arg1: i32) -> (i32, i32) {
    %c0_i32 = arith.constant 0 : i32
    return %arg0, %arg1 : i32, i32
  }
  func.func @transform_1(%arg0: i32, %arg1: i32) -> (i32, i32) {
    %c0_i32 = arith.constant 0 : i32
    %c0_i32_0 = arith.constant 0 : i32
    return %arg1, %c0_i32 : i32, i32
  }
  func.func @transform_2(%arg0: i32, %arg1: i32) -> (i32, i32) {
    %c0_i32 = arith.constant 0 : i32
    %c0_i32_0 = arith.constant 0 : i32
    return %arg0, %c0_i32 : i32, i32
  }
  func.func @transform_3(%arg0: i32, %arg1: i32) -> (i32, i32) {
    %c0_i32 = arith.constant 0 : i32
    %c0_i32_0 = arith.constant 0 : i32
    return %arg0, %c0_i32 : i32, i32
  }
  func.func @transform_4(%arg0: i32, %arg1: i32) -> (i32, i32) {
    %c0_i32 = arith.constant 0 : i32
    %c0_i32_0 = arith.constant 0 : i32
    return %arg0, %c0_i32 : i32, i32
  }
}

module attributes {stable_mosaic.version = 11 : i64} {
  func.func @_bn_relu_kernel(%arg0: i32, %arg1: memref<256x128xf32, #tpu.memory_space<vmem>>, %arg2: memref<1x128xf32, #tpu.memory_space<vmem>>, %arg3: memref<1x128xf32, #tpu.memory_space<vmem>>, %arg4: memref<256x128xf32, #tpu.memory_space<vmem>>) attributes {dimension_semantics = [#tpu.dimension_semantics<parallel>], iteration_bounds = array<i64: 2>, scalar_prefetch = 0 : i64, scratch_operands = 0 : i64, tpu.core_type = #tpu.core_type<tc>, window_params = [{transform_indices = @transform_0, window_bounds = array<i64: 256, 128>}, {pipeline_mode = #tpu.pipeline_mode<synchronous>, transform_indices = @transform_1, window_bounds = array<i64: 1, 128>}, {pipeline_mode = #tpu.pipeline_mode<synchronous>, transform_indices = @transform_2, window_bounds = array<i64: 1, 128>}, {transform_indices = @transform_3, window_bounds = array<i64: 256, 128>}]} {
    %c0 = arith.constant 0 : index
    %c0_0 = arith.constant 0 : index
    %0 = vector.load %arg1[%c0, %c0_0] : memref<256x128xf32, #tpu.memory_space<vmem>>, vector<256x128xf32>
    %c0_1 = arith.constant 0 : index
    %c0_2 = arith.constant 0 : index
    %1 = vector.load %arg2[%c0_1, %c0_2] : memref<1x128xf32, #tpu.memory_space<vmem>>, vector<1x128xf32>
    %2 = vector.broadcast %1 : vector<1x128xf32> to vector<256x128xf32>
    %3 = arith.mulf %0, %2 : vector<256x128xf32>
    %c0_3 = arith.constant 0 : index
    %c0_4 = arith.constant 0 : index
    %4 = vector.load %arg3[%c0_3, %c0_4] : memref<1x128xf32, #tpu.memory_space<vmem>>, vector<1x128xf32>
    %5 = vector.broadcast %4 : vector<1x128xf32> to vector<256x128xf32>
    %6 = arith.addf %3, %5 : vector<256x128xf32>
    %cst = arith.constant 0.000000e+00 : f32
    %7 = vector.broadcast %cst : f32 to vector<256x128xf32>
    %8 = arith.maximumf %6, %7 : vector<256x128xf32>
    %c0_5 = arith.constant 0 : index
    %c0_6 = arith.constant 0 : index
    %9 = vector.load %arg4[%c0_5, %c0_6] : memref<256x128xf32, #tpu.memory_space<vmem>>, vector<256x128xf32>
    tpu.vector_store %arg4[%c0_5, %c0_6], %8 {strides = array<i32>} : memref<256x128xf32, #tpu.memory_space<vmem>>, vector<256x128xf32>,
    return
  }
  func.func @transform_0(%arg0: i32) -> (i32, i32) {
    %c0_i32 = arith.constant 0 : i32
    %c0_i32_0 = arith.constant 0 : i32
    return %arg0, %c0_i32 : i32, i32
  }
  func.func @transform_1(%arg0: i32) -> (i32, i32) {
    %c0_i32 = arith.constant 0 : i32
    %c0_i32_0 = arith.constant 0 : i32
    %c0_i32_1 = arith.constant 0 : i32
    return %c0_i32, %c0_i32_0 : i32, i32
  }
  func.func @transform_2(%arg0: i32) -> (i32, i32) {
    %c0_i32 = arith.constant 0 : i32
    %c0_i32_0 = arith.constant 0 : i32
    %c0_i32_1 = arith.constant 0 : i32
    return %c0_i32, %c0_i32_0 : i32, i32
  }
  func.func @transform_3(%arg0: i32) -> (i32, i32) {
    %c0_i32 = arith.constant 0 : i32
    %c0_i32_0 = arith.constant 0 : i32
    return %arg0, %c0_i32 : i32, i32
  }
}

module attributes {stable_mosaic.version = 11 : i64} {
  func.func @_bn_add_bn_relu_kernel(%arg0: i32, %arg1: memref<256x128xf32, #tpu.memory_space<vmem>>, %arg2: memref<1x128xf32, #tpu.memory_space<vmem>>, %arg3: memref<1x128xf32, #tpu.memory_space<vmem>>, %arg4: memref<256x128xf32, #tpu.memory_space<vmem>>, %arg5: memref<1x128xf32, #tpu.memory_space<vmem>>, %arg6: memref<1x128xf32, #tpu.memory_space<vmem>>, %arg7: memref<256x128xf32, #tpu.memory_space<vmem>>) attributes {dimension_semantics = [#tpu.dimension_semantics<parallel>], iteration_bounds = array<i64: 2>, scalar_prefetch = 0 : i64, scratch_operands = 0 : i64, tpu.core_type = #tpu.core_type<tc>, window_params = [{transform_indices = @transform_0, window_bounds = array<i64: 256, 128>}, {pipeline_mode = #tpu.pipeline_mode<synchronous>, transform_indices = @transform_1, window_bounds = array<i64: 1, 128>}, {pipeline_mode = #tpu.pipeline_mode<synchronous>, transform_indices = @transform_2, window_bounds = array<i64: 1, 128>}, {transform_indices = @transform_3, window_bounds = array<i64: 256, 128>}, {pipeline_mode = #tpu.pipeline_mode<synchronous>, transform_indices = @transform_4, window_bounds = array<i64: 1, 128>}, {pipeline_mode = #tpu.pipeline_mode<synchronous>, transform_indices = @transform_5, window_bounds = array<i64: 1, 128>}, {transform_indices = @transform_6, window_bounds = array<i64: 256, 128>}]} {
    %c0 = arith.constant 0 : index
    %c0_0 = arith.constant 0 : index
    %0 = vector.load %arg1[%c0, %c0_0] : memref<256x128xf32, #tpu.memory_space<vmem>>, vector<256x128xf32>
    %c0_1 = arith.constant 0 : index
    %c0_2 = arith.constant 0 : index
    %1 = vector.load %arg2[%c0_1, %c0_2] : memref<1x128xf32, #tpu.memory_space<vmem>>, vector<1x128xf32>
    %2 = vector.broadcast %1 : vector<1x128xf32> to vector<256x128xf32>
    %3 = arith.mulf %0, %2 : vector<256x128xf32>
    %c0_3 = arith.constant 0 : index
    %c0_4 = arith.constant 0 : index
    %4 = vector.load %arg3[%c0_3, %c0_4] : memref<1x128xf32, #tpu.memory_space<vmem>>, vector<1x128xf32>
    %5 = vector.broadcast %4 : vector<1x128xf32> to vector<256x128xf32>
    %6 = arith.addf %3, %5 : vector<256x128xf32>
    %c0_5 = arith.constant 0 : index
    %c0_6 = arith.constant 0 : index
    %7 = vector.load %arg4[%c0_5, %c0_6] : memref<256x128xf32, #tpu.memory_space<vmem>>, vector<256x128xf32>
    %c0_7 = arith.constant 0 : index
    %c0_8 = arith.constant 0 : index
    %8 = vector.load %arg5[%c0_7, %c0_8] : memref<1x128xf32, #tpu.memory_space<vmem>>, vector<1x128xf32>
    %9 = vector.broadcast %8 : vector<1x128xf32> to vector<256x128xf32>
    %10 = arith.mulf %7, %9 : vector<256x128xf32>
    %c0_9 = arith.constant 0 : index
    %c0_10 = arith.constant 0 : index
    %11 = vector.load %arg6[%c0_9, %c0_10] : memref<1x128xf32, #tpu.memory_space<vmem>>, vector<1x128xf32>
    %12 = vector.broadcast %11 : vector<1x128xf32> to vector<256x128xf32>
    %13 = arith.addf %10, %12 : vector<256x128xf32>
    %14 = arith.addf %6, %13 : vector<256x128xf32>
    %cst = arith.constant 0.000000e+00 : f32
    %15 = vector.broadcast %cst : f32 to vector<256x128xf32>
    %16 = arith.maximumf %14, %15 : vector<256x128xf32>
    %c0_11 = arith.constant 0 : index
    %c0_12 = arith.constant 0 : index
    %17 = vector.load %arg7[%c0_11, %c0_12] : memref<256x128xf32, #tpu.memory_space<vmem>>, vector<256x128xf32>
    tpu.vector_store %arg7[%c0_11, %c0_12], %16 {strides = array<i32>} : memref<256x128xf32, #tpu.memory_space<vmem>>, vector<256x128xf32>,
    return
  }
  func.func @transform_0(%arg0: i32) -> (i32, i32) {
    %c0_i32 = arith.constant 0 : i32
    %c0_i32_0 = arith.constant 0 : i32
    return %arg0, %c0_i32 : i32, i32
  }
  func.func @transform_1(%arg0: i32) -> (i32, i32) {
    %c0_i32 = arith.constant 0 : i32
    %c0_i32_0 = arith.constant 0 : i32
    %c0_i32_1 = arith.constant 0 : i32
    return %c0_i32, %c0_i32_0 : i32, i32
  }
  func.func @transform_2(%arg0: i32) -> (i32, i32) {
    %c0_i32 = arith.constant 0 : i32
    %c0_i32_0 = arith.constant 0 : i32
    %c0_i32_1 = arith.constant 0 : i32
    return %c0_i32, %c0_i32_0 : i32, i32
  }
  func.func @transform_3(%arg0: i32) -> (i32, i32) {
    %c0_i32 = arith.constant 0 : i32
    %c0_i32_0 = arith.constant 0 : i32
    return %arg0, %c0_i32 : i32, i32
  }
  func.func @transform_4(%arg0: i32) -> (i32, i32) {
    %c0_i32 = arith.constant 0 : i32
    %c0_i32_0 = arith.constant 0 : i32
    %c0_i32_1 = arith.constant 0 : i32
    return %c0_i32, %c0_i32_0 : i32, i32
  }
  func.func @transform_5(%arg0: i32) -> (i32, i32) {
    %c0_i32 = arith.constant 0 : i32
    %c0_i32_0 = arith.constant 0 : i32
    %c0_i32_1 = arith.constant 0 : i32
    return %c0_i32, %c0_i32_0 : i32, i32
  }
  func.func @transform_6(%arg0: i32) -> (i32, i32) {
    %c0_i32 = arith.constant 0 : i32
    %c0_i32_0 = arith.constant 0 : i32
    return %arg0, %c0_i32 : i32, i32
  }
}

</mosaic_0001>

<bundles_post_ra>
// kernel: basic_block_forward.6
= control target key start
LH: loop header
LB: loop body
LE: loop exit
PB: predicated region body
PF: predicated region fallthrough
CT: control target
= control target key end

     0   :  { %s453_s12 = smov 0   ;;  %s612_s0 = inlined_call_operand.vmem [shape: f32[512,128], index: 0, kind: input, shape index: {}]   ;;  %s613_s1 = inlined_call_operand.vmem [shape: f32[1,128], index: 1, kind: input, shape index: {}]   ;;  %s614_s2 = inlined_call_operand.vmem [shape: f32[1,128], index: 2, kind: input, shape index: {}]   ;;  %s615_s3 = inlined_call_operand.vmem [shape: f32[512,128], index: 3, kind: output, shape index: {}]  }
   0x1 LB: > { %s404_s13 = sadd.s32 4294967295, %s431_s12   ;;  %p408_p0 = scmp.ge.s32.totalorder %s431_s12, 1  ;;  %s431_s12 = sphi %s453_s12, %s13_s12  }
   0x2   : > { %p138_p1 = scmp.lt.s32.totalorder %s431_s12, 3 }
   0x4   : > { %p139_p2 = pnand %p408_p0, %p138_p1 }
   0x5   : > { %s409_s14 = sshll.u32 (!%p139_p2), %s404_s13, 5  ;;  %v464_v0 = vld [vmem:[%s613_s1] ss:$0 sm:$0xff] (!%p139_p2) }
   0x6   : > { %142 = sbr.rel (%p139_p2) target bundleno = 46 (0x2e), region = 32  ;;  %p163_p3 = scmp.lt.s32.totalorder (!%p139_p2), %s409_s14, 63  ;;  %v474_v1 = vld [vmem:[%s614_s2] ss:$0 sm:$0xff] (!%p139_p2) }
   0xd   : > { %s617_s14 = smov (!%p163_p3, %s409_s14), 63 }
   0xe   : > { %s410_s15 = sshll.u32 %s617_s14, 3 }
   0xf   : > { %s469_s20 = scalar_lea.vmem %s612_s0, %s410_s15  ;;  %s497_s25 = scalar_lea.vmem %s615_s3, %s410_s15 }
  0x10   : > { %v174_v2 = vld [vmem:[%s469_s20] sm:$0xff]  ;;  %v175_v3 = vld [vmem:[%s469_s20 + $0x8] sm:$0xff]  ;;  %v176_v4 = vld [vmem:[%s469_s20 + $0x10] sm:$0xff] }
  0x11   : > { %v213_v5 = vmul.f32 %v464_v0, %v174_v2  ;;  %v214_v6 = vmul.f32 %v464_v0, %v175_v3  ;;  %v215_v7 = vmul.f32 %v464_v0, %v176_v4  ;;  %v177_v8 = vld [vmem:[%s469_s20 + $0x18] sm:$0xff]  ;;  %v178_v9 = vld [vmem:[%s469_s20 + $0x20] sm:$0xff]  ;;  %v179_v10 = vld [vmem:[%s469_s20 + $0x28] sm:$0xff] }
  0x12   : > { %v216_v11 = vmul.f32 %v464_v0, %v177_v8  ;;  %v217_v12 = vmul.f32 %v464_v0, %v178_v9  ;;  %v218_v13 = vmul.f32 %v464_v0, %v179_v10  ;;  %v180_v14 = vld [vmem:[%s469_s20 + $0x30] sm:$0xff]  ;;  %v181_v15 = vld [vmem:[%s469_s20 + $0x38] sm:$0xff]  ;;  %v182_v24 = vld [vmem:[%s469_s20 + $0x40] sm:$0xff] }
  0x13   : > { %v252_v16 = vadd.f32 %v474_v1, %v213_v5  ;;  %v253_v17 = vadd.f32 %v474_v1, %v214_v6  ;;  %v254_v18 = vadd.f32 %v474_v1, %v215_v7  ;;  %v219_v19 = vmul.f32 %v464_v0, %v180_v14  ;;  %v183_v25 = vld [vmem:[%s469_s20 + $0x48] sm:$0xff]  ;;  %v184_v26 = vld [vmem:[%s469_s20 + $0x50] sm:$0xff]  ;;  %v185_v31 = vld [vmem:[%s469_s20 + $0x58] sm:$0xff] }
  0x14   : > { %v255_v20 = vadd.f32 %v474_v1, %v216_v11  ;;  %v256_v21 = vadd.f32 %v474_v1, %v217_v12  ;;  %v257_v22 = vadd.f32 %v474_v1, %v218_v13  ;;  %v220_v23 = vmul.f32 %v464_v0, %v181_v15  ;;  %v186_v32 = vld [vmem:[%s469_s20 + $0x60] sm:$0xff]  ;;  %v187_v33 = vld [vmem:[%s469_s20 + $0x68] sm:$0xff]  ;;  %v188_v38 = vld [vmem:[%s469_s20 + $0x70] sm:$0xff] }
  0x15   : > { %v284_v27 = vmax.f32 %v252_v16, 0.0  ;;  %v285_v28 = vmax.f32 %v253_v17, 0.0  ;;  %v286_v29 = vmax.f32 %v254_v18, 0.0  ;;  %v258_v30 = vadd.f32 %v474_v1, %v219_v19  ;;  %v189_v43 = vld [vmem:[%s469_s20 + $0x78] sm:$0xff]  ;;  %v190_v56 = vld [vmem:[%s469_s20 + $0x80] sm:$0xff]  ;;  %v191_v57 = vld [vmem:[%s469_s20 + $0x88] sm:$0xff] }
  0x16   : > { %v287_v34 = vmax.f32 %v255_v20, 0.0  ;;  %v288_v35 = vmax.f32 %v256_v21, 0.0  ;;  %v289_v36 = vmax.f32 %v257_v22, 0.0  ;;  %v259_v37 = vadd.f32 %v474_v1, %v220_v23  ;;  %v192_v58 = vld [vmem:[%s469_s20 + $0x90] sm:$0xff]  ;;  %v193_v63 = vld [vmem:[%s469_s20 + $0x98] sm:$0xff]  ;;  %v194_v2 = vld [vmem:[%s469_s20 + $0xa0] sm:$0xff] }
  0x17   : > { %316 = vst [vmem:[%s497_s25] sm:$0xff] %v284_v27  ;;  %317 = vst [vmem:[%s497_s25 + $0x8] sm:$0xff] %v285_v28  ;;  %v290_v39 = vmax.f32 %v258_v30, 0.0  ;;  %v221_v40 = vmul.f32 %v464_v0, %v182_v24  ;;  %v222_v41 = vmul.f32 %v464_v0, %v183_v25  ;;  %v223_v42 = vmul.f32 %v464_v0, %v184_v26  ;;  %v195_v3 = vld [vmem:[%s469_s20 + $0xa8] sm:$0xff]  ;;  %v196_v8 = vld [vmem:[%s469_s20 + $0xb0] sm:$0xff] }
  0x18   : > { %318 = vst [vmem:[%s497_s25 + $0x10] sm:$0xff] %v286_v29  ;;  %319 = vst [vmem:[%s497_s25 + $0x18] sm:$0xff] %v287_v34  ;;  %v291_v44 = vmax.f32 %v259_v37, 0.0  ;;  %v224_v45 = vmul.f32 %v464_v0, %v185_v31  ;;  %v225_v46 = vmul.f32 %v464_v0, %v186_v32  ;;  %v226_v47 = vmul.f32 %v464_v0, %v187_v33  ;;  %v197_v13 = vld [vmem:[%s469_s20 + $0xb8] sm:$0xff]  ;;  %v198_v26 = vld [vmem:[%s469_s20 + $0xc0] sm:$0xff] }
  0x19   : > { %320 = vst [vmem:[%s497_s25 + $0x20] sm:$0xff] %v288_v35  ;;  %321 = vst [vmem:[%s497_s25 + $0x28] sm:$0xff] %v289_v36  ;;  %v260_v48 = vadd.f32 %v474_v1, %v221_v40  ;;  %v261_v49 = vadd.f32 %v474_v1, %v222_v41  ;;  %v262_v50 = vadd.f32 %v474_v1, %v223_v42  ;;  %v199_v27 = vld [vmem:[%s469_s20 + $0xc8] sm:$0xff]  ;;  %v200_v28 = vld [vmem:[%s469_s20 + $0xd0] sm:$0xff] }
  0x1a   : > { %322 = vst [vmem:[%s497_s25 + $0x30] sm:$0xff] %v290_v39  ;;  %v227_v51 = vmul.f32 %v464_v0, %v188_v38  ;;  %323 = vst [vmem:[%s497_s25 + $0x38] sm:$0xff] %v291_v44  ;;  %v263_v52 = vadd.f32 %v474_v1, %v224_v45  ;;  %v264_v53 = vadd.f32 %v474_v1, %v225_v46  ;;  %v201_v33 = vld [vmem:[%s469_s20 + $0xd8] sm:$0xff]  ;;  %v202_v34 = vld [vmem:[%s469_s20 + $0xe0] sm:$0xff] }
  0x1b   : > { %v265_v54 = vadd.f32 %v474_v1, %v226_v47  ;;  %v228_v55 = vmul.f32 %v464_v0, %v189_v43  ;;  %v292_v59 = vmax.f32 %v260_v48, 0.0  ;;  %v293_v60 = vmax.f32 %v261_v49, 0.0  ;;  %v203_v35 = vld [vmem:[%s469_s20 + $0xe8] sm:$0xff]  ;;  %v204_v40 = vld [vmem:[%s469_s20 + $0xf0] sm:$0xff]  ;;  %v205_v45 = vld [vmem:[%s469_s20 + $0xf8] sm:$0xff] }
  0x1c   : > { %v294_v61 = vmax.f32 %v262_v50, 0.0  ;;  %v266_v62 = vadd.f32 %v474_v1, %v227_v51  ;;  %v295_v4 = vmax.f32 %v263_v52, 0.0  ;;  %v296_v5 = vmax.f32 %v264_v53, 0.0 }
  0x1d   : > { %v297_v6 = vmax.f32 %v265_v54, 0.0  ;;  %v267_v7 = vadd.f32 %v474_v1, %v228_v55  ;;  %324 = vst [vmem:[%s497_s25 + $0x40] sm:$0xff] %v292_v59  ;;  %325 = vst [vmem:[%s497_s25 + $0x48] sm:$0xff] %v293_v60  ;;  %v229_v10 = vmul.f32 %v464_v0, %v190_v56  ;;  %v230_v11 = vmul.f32 %v464_v0, %v191_v57 }
  0x1e   : > { %326 = vst [vmem:[%s497_s25 + $0x50] sm:$0xff] %v294_v61  ;;  %v298_v9 = vmax.f32 %v266_v62, 0.0  ;;  %v231_v12 = vmul.f32 %v464_v0, %v192_v58  ;;  %327 = vst [vmem:[%s497_s25 + $0x58] sm:$0xff] %v295_v4  ;;  %v232_v15 = vmul.f32 %v464_v0, %v193_v63  ;;  %v233_v16 = vmul.f32 %v464_v0, %v194_v2 }
  0x1f   : > { %328 = vst [vmem:[%s497_s25 + $0x60] sm:$0xff] %v296_v5  ;;  %329 = vst [vmem:[%s497_s25 + $0x68] sm:$0xff] %v297_v6  ;;  %v299_v14 = vmax.f32 %v267_v7, 0.0  ;;  %v234_v17 = vmul.f32 %v464_v0, %v195_v3  ;;  %v268_v18 = vadd.f32 %v474_v1, %v229_v10  ;;  %v269_v19 = vadd.f32 %v474_v1, %v230_v11 }
  0x20   : > { %330 = vst [vmem:[%s497_s25 + $0x70] sm:$0xff] %v298_v9  ;;  %v270_v20 = vadd.f32 %v474_v1, %v231_v12  ;;  %v235_v21 = vmul.f32 %v464_v0, %v196_v8  ;;  %v271_v22 = vadd.f32 %v474_v1, %v232_v15  ;;  %v272_v23 = vadd.f32 %v474_v1, %v233_v16 }
  0x21   : > { %331 = vst [vmem:[%s497_s25 + $0x78] sm:$0xff] %v299_v14  ;;  %v273_v24 = vadd.f32 %v474_v1, %v234_v17  ;;  %v236_v25 = vmul.f32 %v464_v0, %v197_v13  ;;  %v300_v29 = vmax.f32 %v268_v18, 0.0  ;;  %v301_v30 = vmax.f32 %v269_v19, 0.0 }
  0x22   : > { %v302_v31 = vmax.f32 %v270_v20, 0.0  ;;  %v274_v32 = vadd.f32 %v474_v1, %v235_v21  ;;  %v303_v36 = vmax.f32 %v271_v22, 0.0  ;;  %v304_v37 = vmax.f32 %v272_v23, 0.0 }
  0x23   : > { %v305_v38 = vmax.f32 %v273_v24, 0.0  ;;  %v275_v39 = vadd.f32 %v474_v1, %v236_v25  ;;  %332 = vst [vmem:[%s497_s25 + $0x80] sm:$0xff] %v300_v29  ;;  %333 = vst [vmem:[%s497_s25 + $0x88] sm:$0xff] %v301_v30  ;;  %v237_v42 = vmul.f32 %v464_v0, %v198_v26  ;;  %v238_v43 = vmul.f32 %v464_v0, %v199_v27 }
  0x24   : > { %334 = vst [vmem:[%s497_s25 + $0x90] sm:$0xff] %v302_v31  ;;  %v306_v41 = vmax.f32 %v274_v32, 0.0  ;;  %v239_v44 = vmul.f32 %v464_v0, %v200_v28  ;;  %335 = vst [vmem:[%s497_s25 + $0x98] sm:$0xff] %v303_v36  ;;  %v240_v47 = vmul.f32 %v464_v0, %v201_v33  ;;  %v241_v48 = vmul.f32 %v464_v0, %v202_v34 }
  0x25   : > { %336 = vst [vmem:[%s497_s25 + $0xa0] sm:$0xff] %v304_v37  ;;  %337 = vst [vmem:[%s497_s25 + $0xa8] sm:$0xff] %v305_v38  ;;  %v307_v46 = vmax.f32 %v275_v39, 0.0  ;;  %v242_v49 = vmul.f32 %v464_v0, %v203_v35  ;;  %v276_v50 = vadd.f32 %v474_v1, %v237_v42  ;;  %v277_v51 = vadd.f32 %v474_v1, %v238_v43 }
  0x26   : > { %338 = vst [vmem:[%s497_s25 + $0xb0] sm:$0xff] %v306_v41  ;;  %v278_v52 = vadd.f32 %v474_v1, %v239_v44  ;;  %v243_v53 = vmul.f32 %v464_v0, %v204_v40  ;;  %v279_v54 = vadd.f32 %v474_v1, %v240_v47  ;;  %v280_v55 = vadd.f32 %v474_v1, %v241_v48 }
  0x27   : > { %339 = vst [vmem:[%s497_s25 + $0xb8] sm:$0xff] %v307_v46  ;;  %v281_v56 = vadd.f32 %v474_v1, %v242_v49  ;;  %v244_v57 = vmul.f32 %v464_v0, %v205_v45  ;;  %v308_v58 = vmax.f32 %v276_v50, 0.0  ;;  %v309_v59 = vmax.f32 %v277_v51, 0.0 }
  0x28   : > { %v310_v60 = vmax.f32 %v278_v52, 0.0  ;;  %v282_v61 = vadd.f32 %v474_v1, %v243_v53  ;;  %v311_v62 = vmax.f32 %v279_v54, 0.0  ;;  %v312_v63 = vmax.f32 %v280_v55, 0.0 }
  0x29   : > { %v313_v2 = vmax.f32 %v281_v56, 0.0  ;;  %v283_v3 = vadd.f32 %v474_v1, %v244_v57  ;;  %340 = vst [vmem:[%s497_s25 + $0xc0] sm:$0xff] %v308_v58  ;;  %341 = vst [vmem:[%s497_s25 + $0xc8] sm:$0xff] %v309_v59 }
  0x2a   : > { %342 = vst [vmem:[%s497_s25 + $0xd0] sm:$0xff] %v310_v60  ;;  %v314_v4 = vmax.f32 %v282_v61, 0.0  ;;  %343 = vst [vmem:[%s497_s25 + $0xd8] sm:$0xff] %v311_v62 }
  0x2b   : > { %344 = vst [vmem:[%s497_s25 + $0xe0] sm:$0xff] %v312_v63  ;;  %345 = vst [vmem:[%s497_s25 + $0xe8] sm:$0xff] %v313_v2  ;;  %v315_v0 = vmax.f32 %v283_v3, 0.0 }
  0x2c   : > { %346 = vst [vmem:[%s497_s25 + $0xf0] sm:$0xff] %v314_v4 }
  0x2d   : > { %347 = vst [vmem:[%s497_s25 + $0xf8] sm:$0xff] %v315_v0 }
  0x2e PF: > { %s13_s12 = sadd.s32 1, %s431_s12  }
  0x2f   : > { %p10_p4 = scmp.ge.s32.totalorder %s13_s12, 4  }
  0x31   :  { %12 = sbr.rel (!%p10_p4) target bundleno = 1 (0x1), region = 62 }

// kernel: basic_block_forward.5
= control target key start
LH: loop header
LB: loop body
LE: loop exit
PB: predicated region body
PF: predicated region fallthrough
CT: control target
= control target key end

     0   :  { %s1296_s15 = smov 0   ;;  %s1298_s16 = smov 0   ;;  %s1504_s0 = inlined_call_operand.vmem [shape: bf16[512,128], index: 0, kind: input, shape index: {}]   ;;  %s1505_s1 = inlined_call_operand.vmem [shape: bf16[128,128], index: 1, kind: input, shape index: {}]   ;;  %s1506_s2 = inlined_call_operand.vmem [shape: f32[512,128], index: 2, kind: output, shape index: {0}]   ;;  %s1507_s3 = inlined_call_operand.vmem [shape: f32[16,128], index: 3, kind: output, shape index: {1}]   ;;  %s1508_s4 = inlined_call_operand.vmem [shape: f32[16,128], index: 4, kind: output, shape index: {2}]  }
   0x1   :  { %s1300_s17 = smov 0  }
   0x2 LB: > { %s27_s18 = sadd.s32 1, %s1265_s16  ;;  %p1078_p0 = scmp.ge.s32.totalorder %s1269_s17, 1  ;;  %s1269_s17 = sphi %s1300_s17, %s15_s17   ;;  %s1265_s16 = sphi %s1298_s16, %s1510_s16   ;;  %s1261_s15 = sphi %s1296_s15, %s1509_s15  }
   0x3   : > { %p29_p1 = scmp.ge.s32.totalorder %s27_s18, 2  ;;  %p196_p2 = scmp.lt.s32.totalorder %s1269_s17, 3 }
   0x5   : > { %s1512_s18 = smov (%p29_p1, %s27_s18), 0  ;;  %p197_p3 = pnand %p1078_p0, %p196_p2 }
   0x6   : > { %v1223_v0 = vld [vmem:[%s1505_s1] sm:$0xff] (!%p197_p3)   ;;  %s1079_s21 = sshll.u32 (!%p197_p3), %s1261_s15, 5  ;;  %v1224_v1 = vld [vmem:[%s1505_s1 + $0x8] sm:$0xff] (!%p197_p3)   ;;  %v1225_v2 = vld [vmem:[%s1505_s1 + $0x10] sm:$0xff] (!%p197_p3)   ;;  %p259_p5 = scmp.lt.s32.totalorder (!%p197_p3), %s1261_s15, 1 }
   0x7   : > { %200 = sbr.rel (%p197_p3) target bundleno = 331 (0x14b), region = 28  ;;  %p239_p4 = scmp.lt.s32.totalorder (!%p197_p3), %s1079_s21, 63  ;;  %1135 = vmatprep.subr.bf16.mxu0 (!%p197_p3), %v1223_v0  ;;  %1183 = vmatprep.subr.bf16.mxu1 (!%p197_p3), %v1223_v0  ;;  %v1226_v3 = vld [vmem:[%s1505_s1 + $0x18] sm:$0xff] (!%p197_p3)   ;;  %v1227_v5 = vld [vmem:[%s1505_s1 + $0x20] sm:$0xff] (!%p197_p3)   ;;  %v1228_v6 = vld [vmem:[%s1505_s1 + $0x28] sm:$0xff] (!%p197_p3)  }
   0x8   : > { %1136 = vmatpush3.bf16.msra.mxu0 (!%p197_p3), %v1223_v0  ;;  %1191 = vmatpush3.bf16.msra.mxu1 (!%p197_p3), %v1223_v0  ;;  %v1229_v8 = vld [vmem:[%s1505_s1 + $0x30] sm:$0xff] (!%p197_p3)   ;;  %v1230_v9 = vld [vmem:[%s1505_s1 + $0x38] sm:$0xff] (!%p197_p3)  }
   0x9   : > { %1137 = vmatprep.subr.bf16.mxu0 (!%p197_p3), %v1224_v1  ;;  %1184 = vmatprep.subr.bf16.mxu1 (!%p197_p3), %v1224_v1 }
   0xc   : > { %1138 = vmatpush3.bf16.msra.mxu0 (!%p197_p3), %v1224_v1  ;;  %1192 = vmatpush3.bf16.msra.mxu1 (!%p197_p3), %v1224_v1 }
   0xd   : > { %1139 = vmatprep.subr.bf16.mxu0 (!%p197_p3), %v1225_v2  ;;  %1185 = vmatprep.subr.bf16.mxu1 (!%p197_p3), %v1225_v2 }
   0xe   : > { %s1514_s21 = smov (!%p239_p4, %s1079_s21), 63  ;;  %s1516_s15 = smov (!%p259_p5, %s1261_s15), 1 }
   0xf   : > { %s1080_s26 = sshll.u32 %s1514_s21, 2  ;;  %s1082_s14 = sshll.u32 %s1514_s21, 3 }
  0x10   : > { %s1332_s29 = scalar_lea.vmem %s1504_s0, %s1080_s26  ;;  %1140 = vmatpush3.bf16.msra.mxu0 %v1225_v2  ;;  %1193 = vmatpush3.bf16.msra.mxu1 %v1225_v2  ;;  %s1369_s22 = scalar_lea.vmem %s1506_s2, %s1082_s14 }
  0x11   : > { %v1231_v4 = vld [vmem:[%s1332_s29] sm:$0xff]   ;;  %1141 = vmatprep.subr.bf16.mxu0 %v1226_v3  ;;  %1186 = vmatprep.subr.bf16.mxu1 %v1226_v3  ;;  %v1232_v10 = vld [vmem:[%s1332_s29 + $0x8] sm:$0xff]   ;;  %v1233_v12 = vld [vmem:[%s1332_s29 + $0x10] sm:$0xff]   ;;  %s1083_s21 = sshll.u32 %s1516_s15, 3 }
  0x12   : > { %1151 = vmatprep.mubr.bf16.mxu0 %v1231_v4  ;;  %v1239_v7 = vld [vmem:[%s1332_s29 + $0x40] sm:$0xff]   ;;  %v1240_v11 = vld [vmem:[%s1332_s29 + $0x48] sm:$0xff]   ;;  %v1241_v13 = vld [vmem:[%s1332_s29 + $0x50] sm:$0xff]   ;;  %s262_s25 = scalar_lea.vmem %s1507_s3, %s1083_s21  ;;  %s266_s28 = scalar_lea.vmem %s1508_s4, %s1083_s21 }
  0x13   : > { %1167 = vmatprep.mubr.bf16.mxu1 %v1239_v7  ;;  %v1234_v14 = vld [vmem:[%s1332_s29 + $0x18] sm:$0xff]   ;;  %v1235_v16 = vld [vmem:[%s1332_s29 + $0x20] sm:$0xff]   ;;  %v1236_v18 = vld [vmem:[%s1332_s29 + $0x28] sm:$0xff]  }
  0x14   : > { %1142 = vmatpush3.bf16.msra.mxu0 %v1226_v3  ;;  %1194 = vmatpush3.bf16.msra.mxu1 %v1226_v3  ;;  %v1242_v15 = vld [vmem:[%s1332_s29 + $0x58] sm:$0xff]   ;;  %v1243_v17 = vld [vmem:[%s1332_s29 + $0x60] sm:$0xff]   ;;  %v1244_v19 = vld [vmem:[%s1332_s29 + $0x68] sm:$0xff]  }
  0x15   : > { %1143 = vmatprep.subr.bf16.mxu0 %v1227_v5  ;;  %1187 = vmatprep.subr.bf16.mxu1 %v1227_v5  ;;  %v1237_v20 = vld [vmem:[%s1332_s29 + $0x30] sm:$0xff]   ;;  %v1238_v22 = vld [vmem:[%s1332_s29 + $0x38] sm:$0xff]  }
  0x16   : > { %v1245_v21 = vld [vmem:[%s1332_s29 + $0x70] sm:$0xff]   ;;  %v1246_v23 = vld [vmem:[%s1332_s29 + $0x78] sm:$0xff]  }
  0x18   : > { %1144 = vmatpush3.bf16.msra.mxu0 %v1227_v5  ;;  %1195 = vmatpush3.bf16.msra.mxu1 %v1227_v5 }
  0x19   : > { %1145 = vmatprep.subr.bf16.mxu0 %v1228_v6  ;;  %1188 = vmatprep.subr.bf16.mxu1 %v1228_v6 }
  0x1c   : > { %1146 = vmatpush3.bf16.msra.mxu0 %v1228_v6  ;;  %1196 = vmatpush3.bf16.msra.mxu1 %v1228_v6 }
  0x1d   : > { %1147 = vmatprep.subr.bf16.mxu0 %v1229_v8  ;;  %1189 = vmatprep.subr.bf16.mxu1 %v1229_v8 }
  0x20   : > { %1148 = vmatpush3.bf16.msra.mxu0 %v1229_v8  ;;  %1197 = vmatpush3.bf16.msra.mxu1 %v1229_v8 }
  0x21   : > { %1149 = vmatprep.subr.bf16.mxu0 %v1230_v9  ;;  %1190 = vmatprep.subr.bf16.mxu1 %v1230_v9 }
  0x24   : > { %1150 = vmatpush3.bf16.msra.mxu0 %v1230_v9  ;;  %1198 = vmatpush3.bf16.msra.mxu1 %v1230_v9 }
  0x27   : > { %1152 = vmatmul.mubr.bf16.vlgmr.msra.gmra.mrb[0].mxu0 %v1232_v10  ;;  %1168 = vmatmul.mubr.bf16.vlgmr.msra.gmra.mrb[0].mxu1 %v1240_v11 }
  0x28   : > { %1155 = vmatprep.mubr.bf16.mxu0 %v1233_v12  ;;  %1171 = vmatprep.mubr.bf16.mxu1 %v1241_v13 }
  0x2f   : > { %1156 = vmatmul.mubr.bf16.gmra.mrb[4].mxu0 %v1234_v14  ;;  %1172 = vmatmul.mubr.bf16.gmra.mrb[4].mxu1 %v1242_v15 }
  0x30   : > { %1159 = vmatprep.mubr.bf16.mxu0 %v1235_v16  ;;  %1175 = vmatprep.mubr.bf16.mxu1 %v1243_v17 }
  0x37   : > { %1160 = vmatmul.mubr.bf16.gmra.mrb[8].mxu0 %v1236_v18  ;;  %1176 = vmatmul.mubr.bf16.gmra.mrb[8].mxu1 %v1244_v19 }
  0x38   : > { %1163 = vmatprep.mubr.bf16.mxu0 %v1237_v20  ;;  %1179 = vmatprep.mubr.bf16.mxu1 %v1245_v21 }
  0x3f   : > { %1164 = vmatmul.mubr.bf16.gmra.mrb[12].mxu0 %v1238_v22  ;;  %1180 = vmatmul.mubr.bf16.gmra.mrb[12].mxu1 %v1246_v23 }
  0xfa   : > { %v1153_v24 = vpop.f32.mrb[0].mxu0  ;;  %v1371_v25 = vpop.f32.mrb[0].mxu1 }
  0xfb   : > { %790 = vst [vmem:[%s1369_s22 + $0x10] sm:$0xff] %v1153_v24  ;;  %v562_v26 = vpop.f32.mrb[1].mxu0  ;;  %806 = vst [vmem:[%s1369_s22 + $0x90] sm:$0xff] %v1371_v25  ;;  %v1376_v27 = vpop.f32.mrb[1].mxu1  ;;  %v859_v35 = vmul.f32 %v1153_v24, %v1153_v24 }
  0xfc   : > { %788 = vst [vmem:[%s1369_s22] sm:$0xff] %v562_v26  ;;  %v1154_v28 = vpop.f32.mrb[2].mxu0  ;;  %804 = vst [vmem:[%s1369_s22 + $0x80] sm:$0xff] %v1376_v27  ;;  %v1381_v29 = vpop.f32.mrb[2].mxu1  ;;  %v857_v32 = vmul.f32 %v562_v26, %v562_v26 }
  0xfd   : > { %791 = vst [vmem:[%s1369_s22 + $0x18] sm:$0xff] %v1154_v28  ;;  %v565_v30 = vpop.f32.mrb[3].mxu0  ;;  %807 = vst [vmem:[%s1369_s22 + $0x98] sm:$0xff] %v1381_v29  ;;  %v1386_v31 = vpop.f32.mrb[3].mxu1  ;;  %v860_v38 = vmul.f32 %v1154_v28, %v1154_v28 }
  0xfe   : > { %789 = vst [vmem:[%s1369_s22 + $0x8] sm:$0xff] %v565_v30  ;;  %v820_v33 = vadd.f32 %v565_v30, %v562_v26  ;;  %v858_v34 = vmul.f32 %v565_v30, %v565_v30  ;;  %805 = vst [vmem:[%s1369_s22 + $0x88] sm:$0xff] %v1386_v31 }
 0x100   : > { %v821_v36 = vadd.f32 %v1153_v24, %v820_v33  ;;  %v889_v37 = vadd.f32 %v858_v34, %v857_v32 }
 0x102   : > { %v890_v39 = vadd.f32 %v889_v37, %v859_v35  ;;  %v1157_v40 = vpop.f32.mrb[4].mxu0  ;;  %v822_v41 = vadd.f32 %v1154_v28, %v821_v36  ;;  %v1391_v42 = vpop.f32.mrb[4].mxu1 }
 0x103   : > { %794 = vst [vmem:[%s1369_s22 + $0x30] sm:$0xff] %v1157_v40  ;;  %v578_v43 = vpop.f32.mrb[5].mxu0  ;;  %810 = vst [vmem:[%s1369_s22 + $0xb0] sm:$0xff] %v1391_v42  ;;  %v1396_v44 = vpop.f32.mrb[5].mxu1  ;;  %v863_v55 = vmul.f32 %v1157_v40, %v1157_v40 }
 0x104   : > { %792 = vst [vmem:[%s1369_s22 + $0x20] sm:$0xff] %v578_v43  ;;  %v823_v45 = vadd.f32 %v822_v41, %v578_v43  ;;  %v861_v46 = vmul.f32 %v578_v43, %v578_v43  ;;  %v891_v47 = vadd.f32 %v890_v39, %v860_v38  ;;  %v1158_v48 = vpop.f32.mrb[6].mxu0  ;;  %808 = vst [vmem:[%s1369_s22 + $0xa0] sm:$0xff] %v1396_v44  ;;  %v1401_v49 = vpop.f32.mrb[6].mxu1 }
 0x105   : > { %795 = vst [vmem:[%s1369_s22 + $0x38] sm:$0xff] %v1158_v48  ;;  %v581_v50 = vpop.f32.mrb[7].mxu0  ;;  %811 = vst [vmem:[%s1369_s22 + $0xb8] sm:$0xff] %v1401_v49  ;;  %v1406_v51 = vpop.f32.mrb[7].mxu1  ;;  %v864_v58 = vmul.f32 %v1158_v48, %v1158_v48  ;;  %v873_v41 = vmul.f32 %v1376_v27, %v1376_v27 }
 0x106   : > { %v892_v52 = vadd.f32 %v891_v47, %v861_v46  ;;  %793 = vst [vmem:[%s1369_s22 + $0x28] sm:$0xff] %v581_v50  ;;  %v824_v53 = vadd.f32 %v823_v45, %v581_v50  ;;  %v862_v54 = vmul.f32 %v581_v50, %v581_v50  ;;  %809 = vst [vmem:[%s1369_s22 + $0xa8] sm:$0xff] %v1406_v51 }
 0x107   : > { %v875_v50 = vmul.f32 %v1371_v25, %v1371_v25 }
 0x108   : > { %v825_v56 = vadd.f32 %v1157_v40, %v824_v53  ;;  %v893_v57 = vadd.f32 %v892_v52, %v862_v54  ;;  %v876_v54 = vmul.f32 %v1381_v29, %v1381_v29 }
 0x10a   : > { %v894_v59 = vadd.f32 %v893_v57, %v863_v55  ;;  %v1161_v60 = vpop.f32.mrb[8].mxu0  ;;  %v826_v61 = vadd.f32 %v1158_v48, %v825_v56  ;;  %v1411_v62 = vpop.f32.mrb[8].mxu1  ;;  %v874_v48 = vmul.f32 %v1386_v31, %v1386_v31 }
 0x10b   : > { %798 = vst [vmem:[%s1369_s22 + $0x50] sm:$0xff] %v1161_v60  ;;  %v594_v63 = vpop.f32.mrb[9].mxu0  ;;  %814 = vst [vmem:[%s1369_s22 + $0xd0] sm:$0xff] %v1411_v62  ;;  %v1416_v0 = vpop.f32.mrb[9].mxu1  ;;  %v867_v11 = vmul.f32 %v1161_v60, %v1161_v60 }
 0x10c   : > { %796 = vst [vmem:[%s1369_s22 + $0x40] sm:$0xff] %v594_v63  ;;  %v827_v1 = vadd.f32 %v826_v61, %v594_v63  ;;  %v865_v2 = vmul.f32 %v594_v63, %v594_v63  ;;  %v895_v3 = vadd.f32 %v894_v59, %v864_v58  ;;  %v1162_v4 = vpop.f32.mrb[10].mxu0  ;;  %812 = vst [vmem:[%s1369_s22 + $0xc0] sm:$0xff] %v1416_v0  ;;  %v1421_v5 = vpop.f32.mrb[10].mxu1 }
 0x10d   : > { %799 = vst [vmem:[%s1369_s22 + $0x58] sm:$0xff] %v1162_v4  ;;  %v597_v6 = vpop.f32.mrb[11].mxu0  ;;  %815 = vst [vmem:[%s1369_s22 + $0xd8] sm:$0xff] %v1421_v5  ;;  %v1426_v7 = vpop.f32.mrb[11].mxu1  ;;  %v868_v14 = vmul.f32 %v1162_v4, %v1162_v4 }
 0x10e   : > { %v896_v8 = vadd.f32 %v895_v3, %v865_v2  ;;  %797 = vst [vmem:[%s1369_s22 + $0x48] sm:$0xff] %v597_v6  ;;  %v828_v9 = vadd.f32 %v827_v1, %v597_v6  ;;  %v866_v10 = vmul.f32 %v597_v6, %v597_v6  ;;  %813 = vst [vmem:[%s1369_s22 + $0xc8] sm:$0xff] %v1426_v7 }
 0x110   : > { %v829_v12 = vadd.f32 %v1161_v60, %v828_v9  ;;  %v897_v13 = vadd.f32 %v896_v8, %v866_v10  ;;  %v878_v60 = vmul.f32 %v1406_v51, %v1406_v51  ;;  %v882_v8 = vmul.f32 %v1426_v7, %v1426_v7 }
 0x112   : > { %v898_v15 = vadd.f32 %v897_v13, %v867_v11  ;;  %v1165_v16 = vpop.f32.mrb[12].mxu0  ;;  %v830_v17 = vadd.f32 %v1162_v4, %v829_v12  ;;  %v1431_v18 = vpop.f32.mrb[12].mxu1 }
 0x113   : > { %802 = vst [vmem:[%s1369_s22 + $0x70] sm:$0xff] %v1165_v16  ;;  %v610_v19 = vpop.f32.mrb[13].mxu0  ;;  %818 = vst [vmem:[%s1369_s22 + $0xf0] sm:$0xff] %v1431_v18  ;;  %v674_v20 = vpop.f32.mrb[13].mxu1  ;;  %v871_v35 = vmul.f32 %v1165_v16, %v1165_v16 }
 0x114   : > { %800 = vst [vmem:[%s1369_s22 + $0x60] sm:$0xff] %v610_v19  ;;  %v831_v21 = vadd.f32 %v830_v17, %v610_v19  ;;  %v869_v22 = vmul.f32 %v610_v19, %v610_v19  ;;  %v899_v23 = vadd.f32 %v898_v15, %v868_v14  ;;  %v1166_v24 = vpop.f32.mrb[14].mxu0  ;;  %816 = vst [vmem:[%s1369_s22 + $0xe0] sm:$0xff] %v674_v20  ;;  %v1438_v26 = vpop.f32.mrb[14].mxu1 }
 0x115   : > { %803 = vst [vmem:[%s1369_s22 + $0x78] sm:$0xff] %v1166_v24  ;;  %v613_v28 = vpop.f32.mrb[15].mxu0  ;;  %819 = vst [vmem:[%s1369_s22 + $0xf8] sm:$0xff] %v1438_v26  ;;  %v677_v30 = vpop.f32.mrb[15].mxu1  ;;  %v872_v38 = vmul.f32 %v1166_v24, %v1166_v24  ;;  %v885_v12 = vmul.f32 %v674_v20, %v674_v20  ;;  %v887_v17 = vmul.f32 %v1431_v18, %v1431_v18 }
 0x116   : > { %v900_v32 = vadd.f32 %v899_v23, %v869_v22  ;;  %801 = vst [vmem:[%s1369_s22 + $0x68] sm:$0xff] %v613_v28  ;;  %v832_v33 = vadd.f32 %v831_v21, %v613_v28  ;;  %v870_v34 = vmul.f32 %v613_v28, %v613_v28  ;;  %817 = vst [vmem:[%s1369_s22 + $0xe8] sm:$0xff] %v677_v30 }
 0x117   : > { %v888_v21 = vmul.f32 %v1438_v26, %v1438_v26 }
 0x118   : > { %v833_v36 = vadd.f32 %v1165_v16, %v832_v33  ;;  %v901_v37 = vadd.f32 %v900_v32, %v870_v34 }
 0x11a   : > { %v902_v39 = vadd.f32 %v901_v37, %v871_v35  ;;  %v834_v40 = vadd.f32 %v1166_v24, %v833_v36 }
 0x11c   : > { %v835_v43 = vadd.f32 %v834_v40, %v1376_v27  ;;  %v903_v45 = vadd.f32 %v902_v39, %v872_v38  ;;  %v877_v27 = vmul.f32 %v1396_v44, %v1396_v44 }
 0x11e   : > { %v904_v46 = vadd.f32 %v903_v45, %v873_v41  ;;  %v836_v47 = vadd.f32 %v835_v43, %v1386_v31 }
 0x120   : > { %v837_v52 = vadd.f32 %v1371_v25, %v836_v47  ;;  %v905_v53 = vadd.f32 %v904_v46, %v874_v48  ;;  %v879_v25 = vmul.f32 %v1391_v42, %v1391_v42 }
 0x122   : > { %v906_v55 = vadd.f32 %v905_v53, %v875_v50  ;;  %v838_v56 = vadd.f32 %v1381_v29, %v837_v52  ;;  %v880_v29 = vmul.f32 %v1401_v49, %v1401_v49 }
 0x124   : > { %v839_v57 = vadd.f32 %v838_v56, %v1396_v44  ;;  %v907_v58 = vadd.f32 %v906_v55, %v876_v54  ;;  %v881_v44 = vmul.f32 %v1416_v0, %v1416_v0 }
 0x126   : > { %v908_v59 = vadd.f32 %v907_v58, %v877_v27  ;;  %v840_v31 = vadd.f32 %v839_v57, %v1406_v51 }
 0x128   : > { %v841_v61 = vadd.f32 %v1391_v42, %v840_v31  ;;  %v909_v63 = vadd.f32 %v908_v59, %v878_v60  ;;  %v883_v42 = vmul.f32 %v1411_v62, %v1411_v62 }
 0x12a   : > { %v910_v1 = vadd.f32 %v909_v63, %v879_v25  ;;  %v842_v2 = vadd.f32 %v1401_v49, %v841_v61  ;;  %v884_v49 = vmul.f32 %v1421_v5, %v1421_v5 }
 0x12c   : > { %v843_v3 = vadd.f32 %v842_v2, %v1416_v0  ;;  %v911_v4 = vadd.f32 %v910_v1, %v880_v29 }
 0x12e   : > { %v912_v6 = vadd.f32 %v911_v4, %v881_v44  ;;  %v844_v51 = vadd.f32 %v843_v3, %v1426_v7  ;;  %v886_v7 = vmul.f32 %v677_v30, %v677_v30 }
 0x130   : > { %v845_v9 = vadd.f32 %v1411_v62, %v844_v51  ;;  %v913_v10 = vadd.f32 %v912_v6, %v882_v8 }
 0x132   : > { %v914_v11 = vadd.f32 %v913_v10, %v883_v42  ;;  %v846_v0 = vadd.f32 %v1421_v5, %v845_v9 }
 0x134   : > { %v847_v13 = vadd.f32 %v846_v0, %v674_v20  ;;  %v915_v14 = vadd.f32 %v914_v11, %v884_v49 }
 0x136   : > { %v916_v15 = vadd.f32 %v915_v14, %v885_v12  ;;  %v848_v16 = vadd.f32 %v847_v13, %v677_v30 }
 0x138   : > { %v849_v19 = vadd.f32 %v1431_v18, %v848_v16  ;;  %v917_v62 = vadd.f32 %v916_v15, %v886_v7 }
 0x13a   : > { %v850_v22 = vadd.f32 %v1438_v26, %v849_v19  ;;  %v918_v5 = vadd.f32 %v917_v62, %v887_v17 }
 0x13c   : > { %v851_v23 = vrot.slane %v850_v22, 4  ;;  %v919_v24 = vadd.f32 %v918_v5, %v888_v21 }
 0x13e   : > { %v852_v20 = vadd.f32 %v851_v23, %v850_v22  ;;  %v920_v28 = vrot.slane %v919_v24, 4 }
 0x140   : > { %v853_v32 = vrot.slane %v852_v20, 2  ;;  %v921_v30 = vadd.f32 %v920_v28, %v919_v24 }
 0x142   : > { %v854_v33 = vadd.f32 %v853_v32, %v852_v20  ;;  %v922_v34 = vrot.slane %v921_v30, 2 }
 0x144   : > { %v855_v35 = vrot.slane %v854_v33, 1  ;;  %v923_v18 = vadd.f32 %v922_v34, %v921_v30 }
 0x146   : > { %v856_v36 = vadd.f32 %v855_v35, %v854_v33  ;;  %v924_v37 = vrot.slane %v923_v18, 1 }
 0x148   : > { %v925_v26 = vadd.f32 %v924_v37, %v923_v18  ;;  %926 = vst [vmem:[%s262_s25] sm:$0xff] %v856_v36 }
 0x14a   : > { %927 = vst [vmem:[%s266_s28] sm:$0xff] %v925_v26 }
 0x14b PF: > { %s15_s17 = sadd.s32 1, %s1269_s17   ;;  %s1509_s15 = smov %s1265_s16 }
 0x14c   : > { %p12_p6 = scmp.ge.s32.totalorder %s15_s17, 4   ;;  %s1510_s16 = smov %s1512_s18 }
 0x14e   :  { %14 = sbr.rel (!%p12_p6) target bundleno = 2 (0x2), region = 93 }

// kernel: basic_block_forward.9
= control target key start
LH: loop header
LB: loop body
LE: loop exit
PB: predicated region body
PF: predicated region fallthrough
CT: control target
= control target key end

     0   :  { %s729_s21 = smov 0   ;;  %s1004_s0 = inlined_call_operand.vmem [shape: f32[512,128], index: 0, kind: input, shape index: {}]   ;;  %s1005_s1 = inlined_call_operand.vmem [shape: f32[1,128], index: 1, kind: input, shape index: {}]   ;;  %s1006_s2 = inlined_call_operand.vmem [shape: f32[1,128], index: 2, kind: input, shape index: {}]   ;;  %s1007_s3 = inlined_call_operand.vmem [shape: f32[512,128], index: 3, kind: input, shape index: {}]   ;;  %s1008_s4 = inlined_call_operand.vmem [shape: f32[1,128], index: 4, kind: input, shape index: {}]   ;;  %s1009_s5 = inlined_call_operand.vmem [shape: f32[1,128], index: 5, kind: input, shape index: {}]   ;;  %s1010_s6 = inlined_call_operand.vmem [shape: f32[512,128], index: 6, kind: output, shape index: {}]  }
   0x1 LB: > { %s661_s22 = sadd.s32 4294967295, %s692_s21   ;;  %p665_p0 = scmp.ge.s32.totalorder %s692_s21, 1  ;;  %s692_s21 = sphi %s729_s21, %s16_s21  }
   0x2   : > { %p224_p1 = scmp.lt.s32.totalorder %s692_s21, 3 }
   0x4   : > { %p225_p2 = pnand %p665_p0, %p224_p1 }
   0x5   : > { %s666_s23 = sshll.u32 (!%p225_p2), %s661_s22, 5  ;;  %v742_v0 = vld [vmem:[%s1005_s1] ss:$0 sm:$0xff] (!%p225_p2) }
   0x6   : > { %228 = sbr.rel (%p225_p2) target bundleno = 71 (0x47), region = 44  ;;  %p260_p3 = scmp.lt.s32.totalorder (!%p225_p2), %s666_s23, 63  ;;  %v747_v1 = vld [vmem:[%s1008_s4] ss:$0 sm:$0xff] (!%p225_p2) }
   0x7   : > { %v764_v2 = vld [vmem:[%s1006_s2] ss:$0 sm:$0xff] (!%p225_p2) }
   0x8   : > { %v769_v3 = vld [vmem:[%s1009_s5] ss:$0 sm:$0xff] (!%p225_p2) }
   0xd   : > { %s1012_s23 = smov (!%p260_p3, %s666_s23), 63 }
   0xe   : > { %s737_s24 = sshll.u32 %s1012_s23, 3 }
   0xf   : > { %s753_s7 = scalar_lea.vmem %s1004_s0, %s737_s24  ;;  %s759_s10 = scalar_lea.vmem %s1007_s3, %s737_s24 }
  0x10   : > { %v277_v4 = vld [vmem:[%s753_s7] sm:$0xff]  ;;  %v278_v6 = vld [vmem:[%s753_s7 + $0x8] sm:$0xff]  ;;  %v279_v11 = vld [vmem:[%s753_s7 + $0x10] sm:$0xff]  ;;  %s804_s17 = scalar_lea.vmem %s1010_s6, %s737_s24 }
  0x11   : > { %v387_v5 = vld [vmem:[%s759_s10] sm:$0xff]  ;;  %v316_v7 = vmul.f32 %v742_v0, %v277_v4  ;;  %v317_v9 = vmul.f32 %v742_v0, %v278_v6  ;;  %v388_v10 = vld [vmem:[%s759_s10 + $0x8] sm:$0xff]  ;;  %v389_v12 = vld [vmem:[%s759_s10 + $0x10] sm:$0xff]  ;;  %v318_v14 = vmul.f32 %v742_v0, %v279_v11 }
  0x12   : > { %v426_v8 = vmul.f32 %v747_v1, %v387_v5  ;;  %v427_v13 = vmul.f32 %v747_v1, %v388_v10  ;;  %v428_v15 = vmul.f32 %v747_v1, %v389_v12  ;;  %v280_v16 = vld [vmem:[%s753_s7 + $0x18] sm:$0xff]  ;;  %v281_v18 = vld [vmem:[%s753_s7 + $0x20] sm:$0xff]  ;;  %v282_v24 = vld [vmem:[%s753_s7 + $0x28] sm:$0xff] }
  0x13   : > { %v390_v17 = vld [vmem:[%s759_s10 + $0x18] sm:$0xff]  ;;  %v355_v19 = vadd.f32 %v764_v2, %v316_v7  ;;  %v356_v21 = vadd.f32 %v764_v2, %v317_v9  ;;  %v319_v22 = vmul.f32 %v742_v0, %v280_v16  ;;  %v391_v23 = vld [vmem:[%s759_s10 + $0x20] sm:$0xff]  ;;  %v357_v26 = vadd.f32 %v764_v2, %v318_v14  ;;  %v392_v29 = vld [vmem:[%s759_s10 + $0x28] sm:$0xff] }
  0x14   : > { %v465_v20 = vadd.f32 %v769_v3, %v426_v8  ;;  %v466_v25 = vadd.f32 %v769_v3, %v427_v13  ;;  %v467_v27 = vadd.f32 %v769_v3, %v428_v15  ;;  %v429_v28 = vmul.f32 %v747_v1, %v390_v17  ;;  %v283_v38 = vld [vmem:[%s753_s7 + $0x30] sm:$0xff]  ;;  %v284_v44 = vld [vmem:[%s753_s7 + $0x38] sm:$0xff]  ;;  %v285_v46 = vld [vmem:[%s753_s7 + $0x40] sm:$0xff] }
  0x15   : > { %v358_v31 = vadd.f32 %v764_v2, %v319_v22  ;;  %v320_v32 = vmul.f32 %v742_v0, %v281_v18  ;;  %v430_v33 = vmul.f32 %v747_v1, %v391_v23  ;;  %v321_v37 = vmul.f32 %v742_v0, %v282_v24  ;;  %v393_v39 = vld [vmem:[%s759_s10 + $0x30] sm:$0xff]  ;;  %v394_v45 = vld [vmem:[%s759_s10 + $0x38] sm:$0xff]  ;;  %v395_v55 = vld [vmem:[%s759_s10 + $0x40] sm:$0xff] }
  0x16   : > { %v497_v30 = vadd.f32 %v465_v20, %v355_v19  ;;  %v498_v34 = vadd.f32 %v466_v25, %v356_v21  ;;  %v499_v35 = vadd.f32 %v467_v27, %v357_v26  ;;  %v468_v36 = vadd.f32 %v769_v3, %v429_v28  ;;  %v286_v60 = vld [vmem:[%s753_s7 + $0x48] sm:$0xff]  ;;  %v287_v6 = vld [vmem:[%s753_s7 + $0x50] sm:$0xff]  ;;  %v288_v12 = vld [vmem:[%s753_s7 + $0x58] sm:$0xff] }
  0x17   : > { %v359_v41 = vadd.f32 %v764_v2, %v320_v32  ;;  %v469_v42 = vadd.f32 %v769_v3, %v430_v33  ;;  %v431_v43 = vmul.f32 %v747_v1, %v392_v29  ;;  %v360_v50 = vadd.f32 %v764_v2, %v321_v37  ;;  %v396_v61 = vld [vmem:[%s759_s10 + $0x48] sm:$0xff]  ;;  %v397_v7 = vld [vmem:[%s759_s10 + $0x50] sm:$0xff]  ;;  %v398_v21 = vld [vmem:[%s759_s10 + $0x58] sm:$0xff] }
  0x18   : > { %v529_v40 = vmax.f32 %v497_v30, 0.0  ;;  %v530_v47 = vmax.f32 %v498_v34, 0.0  ;;  %v531_v48 = vmax.f32 %v499_v35, 0.0  ;;  %v500_v49 = vadd.f32 %v468_v36, %v358_v31  ;;  %v289_v22 = vld [vmem:[%s753_s7 + $0x60] sm:$0xff]  ;;  %v290_v28 = vld [vmem:[%s753_s7 + $0x68] sm:$0xff] }
  0x19   : > { %v501_v51 = vadd.f32 %v469_v42, %v359_v41  ;;  %v470_v52 = vadd.f32 %v769_v3, %v431_v43  ;;  %v322_v53 = vmul.f32 %v742_v0, %v283_v38  ;;  %v432_v54 = vmul.f32 %v747_v1, %v393_v39  ;;  %v399_v27 = vld [vmem:[%s759_s10 + $0x60] sm:$0xff]  ;;  %v400_v33 = vld [vmem:[%s759_s10 + $0x68] sm:$0xff]  ;;  %v291_v38 = vld [vmem:[%s753_s7 + $0x70] sm:$0xff] }
  0x1a   : > { %561 = vst [vmem:[%s804_s17] sm:$0xff] %v529_v40  ;;  %562 = vst [vmem:[%s804_s17 + $0x8] sm:$0xff] %v530_v47  ;;  %v532_v56 = vmax.f32 %v500_v49, 0.0  ;;  %v323_v57 = vmul.f32 %v742_v0, %v284_v44  ;;  %v433_v58 = vmul.f32 %v747_v1, %v394_v45  ;;  %v324_v59 = vmul.f32 %v742_v0, %v285_v46  ;;  %v401_v43 = vld [vmem:[%s759_s10 + $0x70] sm:$0xff]  ;;  %v292_v44 = vld [vmem:[%s753_s7 + $0x78] sm:$0xff] }
  0x1b   : > { %563 = vst [vmem:[%s804_s17 + $0x10] sm:$0xff] %v531_v48  ;;  %v533_v62 = vmax.f32 %v501_v51, 0.0  ;;  %v502_v63 = vadd.f32 %v470_v52, %v360_v50  ;;  %v361_v4 = vadd.f32 %v764_v2, %v322_v53  ;;  %v471_v5 = vadd.f32 %v769_v3, %v432_v54  ;;  %v402_v49 = vld [vmem:[%s759_s10 + $0x78] sm:$0xff]  ;;  %v293_v50 = vld [vmem:[%s753_s7 + $0x80] sm:$0xff] }
  0x1c   : > { %564 = vst [vmem:[%s804_s17 + $0x18] sm:$0xff] %v532_v56  ;;  %v362_v8 = vadd.f32 %v764_v2, %v323_v57  ;;  %v472_v9 = vadd.f32 %v769_v3, %v433_v58  ;;  %v363_v10 = vadd.f32 %v764_v2, %v324_v59  ;;  %v434_v11 = vmul.f32 %v747_v1, %v395_v55  ;;  %v403_v59 = vld [vmem:[%s759_s10 + $0x80] sm:$0xff] }
  0x1d   : > { %565 = vst [vmem:[%s804_s17 + $0x20] sm:$0xff] %v533_v62  ;;  %v534_v13 = vmax.f32 %v502_v63, 0.0  ;;  %v503_v14 = vadd.f32 %v471_v5, %v361_v4  ;;  %v325_v15 = vmul.f32 %v742_v0, %v286_v60  ;;  %v435_v16 = vmul.f32 %v747_v1, %v396_v61  ;;  %v294_v4 = vld [vmem:[%s753_s7 + $0x88] sm:$0xff] }
  0x1e   : > { %v504_v17 = vadd.f32 %v472_v9, %v362_v8  ;;  %v473_v18 = vadd.f32 %v769_v3, %v434_v11  ;;  %v326_v19 = vmul.f32 %v742_v0, %v287_v6  ;;  %v436_v20 = vmul.f32 %v747_v1, %v397_v7  ;;  %v404_v5 = vld [vmem:[%s759_s10 + $0x88] sm:$0xff]  ;;  %v405_v11 = vld [vmem:[%s759_s10 + $0x90] sm:$0xff] }
  0x1f   : > { %566 = vst [vmem:[%s804_s17 + $0x28] sm:$0xff] %v534_v13  ;;  %v535_v23 = vmax.f32 %v503_v14, 0.0  ;;  %v364_v24 = vadd.f32 %v764_v2, %v325_v15  ;;  %v474_v25 = vadd.f32 %v769_v3, %v435_v16  ;;  %v327_v26 = vmul.f32 %v742_v0, %v288_v12  ;;  %v296_v16 = vld [vmem:[%s753_s7 + $0x98] sm:$0xff] }
  0x20   : > { %v536_v29 = vmax.f32 %v504_v17, 0.0  ;;  %v505_v30 = vadd.f32 %v473_v18, %v363_v10  ;;  %v365_v31 = vadd.f32 %v764_v2, %v326_v19  ;;  %v475_v32 = vadd.f32 %v769_v3, %v436_v20  ;;  %v295_v10 = vld [vmem:[%s753_s7 + $0x90] sm:$0xff] }
  0x21   : > { %567 = vst [vmem:[%s804_s17 + $0x30] sm:$0xff] %v535_v23  ;;  %v506_v34 = vadd.f32 %v474_v25, %v364_v24  ;;  %v366_v35 = vadd.f32 %v764_v2, %v327_v26  ;;  %v437_v36 = vmul.f32 %v747_v1, %v398_v21  ;;  %v328_v37 = vmul.f32 %v742_v0, %v289_v22  ;;  %v406_v25 = vld [vmem:[%s759_s10 + $0x98] sm:$0xff]  ;;  %v297_v26 = vld [vmem:[%s753_s7 + $0xa0] sm:$0xff] }
  0x22   : > { %568 = vst [vmem:[%s804_s17 + $0x38] sm:$0xff] %v536_v29  ;;  %v537_v39 = vmax.f32 %v505_v30, 0.0  ;;  %v507_v40 = vadd.f32 %v475_v32, %v365_v31  ;;  %v438_v41 = vmul.f32 %v747_v1, %v399_v27  ;;  %v329_v42 = vmul.f32 %v742_v0, %v290_v28  ;;  %v407_v31 = vld [vmem:[%s759_s10 + $0xa0] sm:$0xff]  ;;  %v298_v32 = vld [vmem:[%s753_s7 + $0xa8] sm:$0xff] }
  0x23   : > { %v538_v45 = vmax.f32 %v506_v34, 0.0  ;;  %v476_v46 = vadd.f32 %v769_v3, %v437_v36  ;;  %v367_v47 = vadd.f32 %v764_v2, %v328_v37  ;;  %v439_v48 = vmul.f32 %v747_v1, %v400_v33  ;;  %v408_v37 = vld [vmem:[%s759_s10 + $0xa8] sm:$0xff] }
  0x24   : > { %569 = vst [vmem:[%s804_s17 + $0x40] sm:$0xff] %v537_v39  ;;  %v539_v51 = vmax.f32 %v507_v40, 0.0  ;;  %v477_v52 = vadd.f32 %v769_v3, %v438_v41  ;;  %v368_v53 = vadd.f32 %v764_v2, %v329_v42  ;;  %v330_v54 = vmul.f32 %v742_v0, %v291_v38  ;;  %v299_v42 = vld [vmem:[%s753_s7 + $0xb0] sm:$0xff] }
  0x25   : > { %570 = vst [vmem:[%s804_s17 + $0x48] sm:$0xff] %v538_v45  ;;  %v508_v55 = vadd.f32 %v476_v46, %v366_v35  ;;  %v478_v56 = vadd.f32 %v769_v3, %v439_v48  ;;  %v440_v57 = vmul.f32 %v747_v1, %v401_v43  ;;  %v331_v58 = vmul.f32 %v742_v0, %v292_v44  ;;  %v300_v48 = vld [vmem:[%s753_s7 + $0xb8] sm:$0xff] }
  0x26   : > { %571 = vst [vmem:[%s804_s17 + $0x50] sm:$0xff] %v539_v51  ;;  %v509_v60 = vadd.f32 %v477_v52, %v367_v47  ;;  %v369_v61 = vadd.f32 %v764_v2, %v330_v54  ;;  %v441_v62 = vmul.f32 %v747_v1, %v402_v49  ;;  %v332_v63 = vmul.f32 %v742_v0, %v293_v50  ;;  %v409_v47 = vld [vmem:[%s759_s10 + $0xb0] sm:$0xff]  ;;  %v301_v54 = vld [vmem:[%s753_s7 + $0xc0] sm:$0xff] }
  0x27   : > { %v540_v6 = vmax.f32 %v508_v55, 0.0  ;;  %v510_v7 = vadd.f32 %v478_v56, %v368_v53  ;;  %v479_v8 = vadd.f32 %v769_v3, %v440_v57  ;;  %v370_v9 = vadd.f32 %v764_v2, %v331_v58  ;;  %v410_v53 = vld [vmem:[%s759_s10 + $0xb8] sm:$0xff] }
  0x28   : > { %v541_v12 = vmax.f32 %v509_v60, 0.0  ;;  %v480_v13 = vadd.f32 %v769_v3, %v441_v62  ;;  %v371_v14 = vadd.f32 %v764_v2, %v332_v63  ;;  %v442_v15 = vmul.f32 %v747_v1, %v403_v59  ;;  %v411_v63 = vld [vmem:[%s759_s10 + $0xc0] sm:$0xff] }
  0x29   : > { %572 = vst [vmem:[%s804_s17 + $0x58] sm:$0xff] %v540_v6  ;;  %v542_v17 = vmax.f32 %v510_v7, 0.0  ;;  %v511_v18 = vadd.f32 %v479_v8, %v369_v61  ;;  %v333_v19 = vmul.f32 %v742_v0, %v294_v4  ;;  %v443_v20 = vmul.f32 %v747_v1, %v404_v5  ;;  %v302_v8 = vld [vmem:[%s753_s7 + $0xc8] sm:$0xff] }
  0x2a   : > { %573 = vst [vmem:[%s804_s17 + $0x60] sm:$0xff] %v541_v12  ;;  %v512_v21 = vadd.f32 %v480_v13, %v370_v9  ;;  %v481_v22 = vadd.f32 %v769_v3, %v442_v15  ;;  %v334_v23 = vmul.f32 %v742_v0, %v295_v10  ;;  %v444_v24 = vmul.f32 %v747_v1, %v405_v11  ;;  %v412_v9 = vld [vmem:[%s759_s10 + $0xc8] sm:$0xff]  ;;  %v413_v15 = vld [vmem:[%s759_s10 + $0xd0] sm:$0xff] }
  0x2b   : > { %574 = vst [vmem:[%s804_s17 + $0x68] sm:$0xff] %v542_v17  ;;  %v543_v27 = vmax.f32 %v511_v18, 0.0  ;;  %v372_v28 = vadd.f32 %v764_v2, %v333_v19  ;;  %v482_v29 = vadd.f32 %v769_v3, %v443_v20  ;;  %v335_v30 = vmul.f32 %v742_v0, %v296_v16  ;;  %v304_v20 = vld [vmem:[%s753_s7 + $0xd8] sm:$0xff] }
  0x2c   : > { %v544_v33 = vmax.f32 %v512_v21, 0.0  ;;  %v513_v34 = vadd.f32 %v481_v22, %v371_v14  ;;  %v373_v35 = vadd.f32 %v764_v2, %v334_v23  ;;  %v483_v36 = vadd.f32 %v769_v3, %v444_v24  ;;  %v303_v14 = vld [vmem:[%s753_s7 + $0xd0] sm:$0xff] }
  0x2d   : > { %575 = vst [vmem:[%s804_s17 + $0x70] sm:$0xff] %v543_v27  ;;  %v514_v38 = vadd.f32 %v482_v29, %v372_v28  ;;  %v374_v39 = vadd.f32 %v764_v2, %v335_v30  ;;  %v445_v40 = vmul.f32 %v747_v1, %v406_v25  ;;  %v336_v41 = vmul.f32 %v742_v0, %v297_v26  ;;  %v414_v29 = vld [vmem:[%s759_s10 + $0xd8] sm:$0xff]  ;;  %v305_v30 = vld [vmem:[%s753_s7 + $0xe0] sm:$0xff] }
  0x2e   : > { %576 = vst [vmem:[%s804_s17 + $0x78] sm:$0xff] %v544_v33  ;;  %v545_v43 = vmax.f32 %v513_v34, 0.0  ;;  %v515_v44 = vadd.f32 %v483_v36, %v373_v35  ;;  %v446_v45 = vmul.f32 %v747_v1, %v407_v31  ;;  %v337_v46 = vmul.f32 %v742_v0, %v298_v32  ;;  %v415_v35 = vld [vmem:[%s759_s10 + $0xe0] sm:$0xff]  ;;  %v306_v36 = vld [vmem:[%s753_s7 + $0xe8] sm:$0xff] }
  0x2f   : > { %v546_v49 = vmax.f32 %v514_v38, 0.0  ;;  %v484_v50 = vadd.f32 %v769_v3, %v445_v40  ;;  %v375_v51 = vadd.f32 %v764_v2, %v336_v41  ;;  %v447_v52 = vmul.f32 %v747_v1, %v408_v37  ;;  %v416_v41 = vld [vmem:[%s759_s10 + $0xe8] sm:$0xff] }
  0x30   : > { %577 = vst [vmem:[%s804_s17 + $0x80] sm:$0xff] %v545_v43  ;;  %v547_v55 = vmax.f32 %v515_v44, 0.0  ;;  %v485_v56 = vadd.f32 %v769_v3, %v446_v45  ;;  %v376_v57 = vadd.f32 %v764_v2, %v337_v46  ;;  %v338_v58 = vmul.f32 %v742_v0, %v299_v42  ;;  %v307_v46 = vld [vmem:[%s753_s7 + $0xf0] sm:$0xff] }
  0x31   : > { %578 = vst [vmem:[%s804_s17 + $0x88] sm:$0xff] %v546_v49  ;;  %v516_v59 = vadd.f32 %v484_v50, %v374_v39  ;;  %v486_v60 = vadd.f32 %v769_v3, %v447_v52  ;;  %v448_v61 = vmul.f32 %v747_v1, %v409_v47  ;;  %v339_v62 = vmul.f32 %v742_v0, %v300_v48  ;;  %v308_v52 = vld [vmem:[%s753_s7 + $0xf8] sm:$0xff] }
  0x32   : > { %579 = vst [vmem:[%s804_s17 + $0x90] sm:$0xff] %v547_v55  ;;  %v517_v4 = vadd.f32 %v485_v56, %v375_v51  ;;  %v377_v5 = vadd.f32 %v764_v2, %v338_v58  ;;  %v449_v6 = vmul.f32 %v747_v1, %v410_v53  ;;  %v340_v7 = vmul.f32 %v742_v0, %v301_v54  ;;  %v417_v51 = vld [vmem:[%s759_s10 + $0xf0] sm:$0xff] }
  0x33   : > { %v548_v10 = vmax.f32 %v516_v59, 0.0  ;;  %v518_v11 = vadd.f32 %v486_v60, %v376_v57  ;;  %v487_v12 = vadd.f32 %v769_v3, %v448_v61  ;;  %v378_v13 = vadd.f32 %v764_v2, %v339_v62  ;;  %v418_v57 = vld [vmem:[%s759_s10 + $0xf8] sm:$0xff] }
  0x34   : > { %v549_v16 = vmax.f32 %v517_v4, 0.0  ;;  %v488_v17 = vadd.f32 %v769_v3, %v449_v6  ;;  %v379_v18 = vadd.f32 %v764_v2, %v340_v7  ;;  %v450_v19 = vmul.f32 %v747_v1, %v411_v63 }
  0x35   : > { %580 = vst [vmem:[%s804_s17 + $0x98] sm:$0xff] %v548_v10  ;;  %v550_v21 = vmax.f32 %v518_v11, 0.0  ;;  %v519_v22 = vadd.f32 %v487_v12, %v377_v5  ;;  %v341_v23 = vmul.f32 %v742_v0, %v302_v8  ;;  %v451_v24 = vmul.f32 %v747_v1, %v412_v9 }
  0x36   : > { %581 = vst [vmem:[%s804_s17 + $0xa0] sm:$0xff] %v549_v16  ;;  %v520_v25 = vadd.f32 %v488_v17, %v378_v13  ;;  %v489_v26 = vadd.f32 %v769_v3, %v450_v19  ;;  %v342_v27 = vmul.f32 %v742_v0, %v303_v14  ;;  %v452_v28 = vmul.f32 %v747_v1, %v413_v15 }
  0x37   : > { %582 = vst [vmem:[%s804_s17 + $0xa8] sm:$0xff] %v550_v21  ;;  %v551_v31 = vmax.f32 %v519_v22, 0.0  ;;  %v380_v32 = vadd.f32 %v764_v2, %v341_v23  ;;  %v490_v33 = vadd.f32 %v769_v3, %v451_v24  ;;  %v343_v34 = vmul.f32 %v742_v0, %v304_v20 }
  0x38   : > { %v552_v37 = vmax.f32 %v520_v25, 0.0  ;;  %v521_v38 = vadd.f32 %v489_v26, %v379_v18  ;;  %v381_v39 = vadd.f32 %v764_v2, %v342_v27  ;;  %v491_v40 = vadd.f32 %v769_v3, %v452_v28 }
  0x39   : > { %583 = vst [vmem:[%s804_s17 + $0xb0] sm:$0xff] %v551_v31  ;;  %v522_v42 = vadd.f32 %v490_v33, %v380_v32  ;;  %v382_v43 = vadd.f32 %v764_v2, %v343_v34  ;;  %v453_v44 = vmul.f32 %v747_v1, %v414_v29  ;;  %v344_v45 = vmul.f32 %v742_v0, %v305_v30 }
  0x3a   : > { %584 = vst [vmem:[%s804_s17 + $0xb8] sm:$0xff] %v552_v37  ;;  %v553_v47 = vmax.f32 %v521_v38, 0.0  ;;  %v523_v48 = vadd.f32 %v491_v40, %v381_v39  ;;  %v454_v49 = vmul.f32 %v747_v1, %v415_v35  ;;  %v345_v50 = vmul.f32 %v742_v0, %v306_v36 }
  0x3b   : > { %v554_v53 = vmax.f32 %v522_v42, 0.0  ;;  %v492_v54 = vadd.f32 %v769_v3, %v453_v44  ;;  %v383_v55 = vadd.f32 %v764_v2, %v344_v45  ;;  %v455_v56 = vmul.f32 %v747_v1, %v416_v41 }
  0x3c   : > { %585 = vst [vmem:[%s804_s17 + $0xc0] sm:$0xff] %v553_v47  ;;  %v555_v58 = vmax.f32 %v523_v48, 0.0  ;;  %v493_v59 = vadd.f32 %v769_v3, %v454_v49  ;;  %v384_v60 = vadd.f32 %v764_v2, %v345_v50  ;;  %v346_v61 = vmul.f32 %v742_v0, %v307_v46 }
  0x3d   : > { %586 = vst [vmem:[%s804_s17 + $0xc8] sm:$0xff] %v554_v53  ;;  %v524_v62 = vadd.f32 %v492_v54, %v382_v43  ;;  %v494_v63 = vadd.f32 %v769_v3, %v455_v56  ;;  %v456_v4 = vmul.f32 %v747_v1, %v417_v51  ;;  %v347_v5 = vmul.f32 %v742_v0, %v308_v52 }
  0x3e   : > { %587 = vst [vmem:[%s804_s17 + $0xd0] sm:$0xff] %v555_v58  ;;  %v525_v6 = vadd.f32 %v493_v59, %v383_v55  ;;  %v385_v7 = vadd.f32 %v764_v2, %v346_v61  ;;  %v457_v8 = vmul.f32 %v747_v1, %v418_v57 }
  0x3f   : > { %v556_v9 = vmax.f32 %v524_v62, 0.0  ;;  %v526_v10 = vadd.f32 %v494_v63, %v384_v60  ;;  %v495_v11 = vadd.f32 %v769_v3, %v456_v4  ;;  %v386_v12 = vadd.f32 %v764_v2, %v347_v5 }
  0x40   : > { %v557_v13 = vmax.f32 %v525_v6, 0.0  ;;  %v496_v14 = vadd.f32 %v769_v3, %v457_v8 }
  0x41   : > { %588 = vst [vmem:[%s804_s17 + $0xd8] sm:$0xff] %v556_v9  ;;  %v558_v0 = vmax.f32 %v526_v10, 0.0  ;;  %v527_v15 = vadd.f32 %v495_v11, %v385_v7 }
  0x42   : > { %589 = vst [vmem:[%s804_s17 + $0xe0] sm:$0xff] %v557_v13  ;;  %v528_v16 = vadd.f32 %v496_v14, %v386_v12 }
  0x43   : > { %590 = vst [vmem:[%s804_s17 + $0xe8] sm:$0xff] %v558_v0  ;;  %v559_v17 = vmax.f32 %v527_v15, 0.0 }
  0x44   : > { %v560_v18 = vmax.f32 %v528_v16, 0.0 }
  0x45   : > { %591 = vst [vmem:[%s804_s17 + $0xf0] sm:$0xff] %v559_v17 }
  0x46   : > { %592 = vst [vmem:[%s804_s17 + $0xf8] sm:$0xff] %v560_v18 }
  0x47 PF: > { %s16_s21 = sadd.s32 1, %s692_s21  }
  0x48   : > { %p13_p4 = scmp.ge.s32.totalorder %s16_s21, 4  }
  0x4a   :  { %15 = sbr.rel (!%p13_p4) target bundleno = 1 (0x1), region = 77 }

</bundles_post_ra>
